<compile_context>
chip_gen: v7x
topology: tpu7x:2x2x1
jax: 0.10.0
libtpu: 0.0.40
codegen_flags: <defaults>
</compile_context>

<pallas_src>
import jax
import jax.numpy as jnp
from jax.experimental import pallas as pl
from jax.experimental.pallas import tpu as pltpu


def _round_up(x, m):
    return ((x + m - 1) // m) * m


def _pad2d(a, rows, cols, dtype):
    a = a.astype(dtype)
    if a.shape == (rows, cols):
        return a
    return jnp.zeros((rows, cols), dtype).at[: a.shape[0], : a.shape[1]].set(a)


def ffn_kernel(x_ref, w1_ref, b1_ref, w2_ref, b2_ref, o_ref, acc_ref):
    # x_ref:  (tm, D)    row tile (bf16), same block for every k
    # w1_ref: (D, tff)   chunk of W1^T (bf16)
    # b1_ref: (1, tff)   chunk of b1 (f32)
    # w2_ref: (tff, D)   chunk of W2^T (bf16)
    # b2_ref: (1, D)     full b2 (f32)
    # o_ref:  (tm, D)    output tile, written on the last k
    # acc_ref:(tm, D)    f32 accumulator, resident across the k (DFF) axis
    k = pl.program_id(1)

    @pl.when(k == 0)
    def _():
        acc_ref[...] = jnp.zeros_like(acc_ref)

    # First GEMM chunk on the MXU -> f32; bias add + ReLU in f32 on the VPU.
    h = jnp.dot(x_ref[...], w1_ref[...], preferred_element_type=jnp.float32)
    h = jnp.maximum(h + b1_ref[...], 0.0)

    # Second GEMM chunk; narrow operands to the weight dtype, accumulate in f32.
    acc_ref[...] += jnp.dot(
        h.astype(w2_ref.dtype), w2_ref[...], preferred_element_type=jnp.float32
    )

    @pl.when(k == pl.num_programs(1) - 1)
    def _():
        o_ref[...] = (acc_ref[...] + b2_ref[...]).astype(o_ref.dtype)


def feed_forward_layer(x, w1, b1, w2, b2, *, tm=256, tff=512,
                       compute_dtype=jnp.bfloat16):
    """x: [B, S, inner]; w1: (dff, inner); b1: (dff,); w2: (inner, dff); b2: (inner,).

    Matches the PyTorch forward: lin2(relu(lin1(x))).
    """
    B, S, D = x.shape
    DFF = w1.shape[0]
    M = B * S
    out_dtype = x.dtype

    # Tile sizes: keep MXU/lane alignment, shrink for tiny problems.
    row_mult = 16 if compute_dtype == jnp.bfloat16 else 8
    tm = min(tm, _round_up(M, row_mult))
    tff = min(tff, _round_up(DFF, 128))
    M_pad = _round_up(M, tm)
    D_pad = _round_up(D, 128)
    DFF_pad = _round_up(DFF, tff)

    # Weights pre-transposed to (in, out); zero-padding the extra W1 columns /
    # b1 entries / W2 rows / feature columns leaves the math unchanged.
    x2d = _pad2d(x.reshape(M, D), M_pad, D_pad, compute_dtype)
    w1_t = _pad2d(w1.T, D_pad, DFF_pad, compute_dtype)
    w2_t = _pad2d(w2.T, DFF_pad, D_pad, compute_dtype)
    b1_2d = _pad2d(b1[None, :], 1, DFF_pad, jnp.float32)
    b2_2d = _pad2d(b2[None, :], 1, D_pad, jnp.float32)

    grid = (M_pad // tm, DFF_pad // tff)

    in_bytes = jnp.dtype(compute_dtype).itemsize
    cost = pl.CostEstimate(
        flops=4 * M_pad * D_pad * DFF_pad,  # two GEMMs, 2*M*D*DFF each
        transcendentals=0,
        bytes_accessed=(x2d.size + w1_t.size + w2_t.size) * in_bytes
        + M_pad * D_pad * jnp.dtype(out_dtype).itemsize,
    )

    out2d = pl.pallas_call(
        ffn_kernel,
        out_shape=jax.ShapeDtypeStruct((M_pad, D_pad), out_dtype),
        grid_spec=pltpu.PrefetchScalarGridSpec(
            num_scalar_prefetch=0,
            grid=grid,
            in_specs=[
                pl.BlockSpec((tm, D_pad), lambda i, k: (i, 0)),    # x rows
                pl.BlockSpec((D_pad, tff), lambda i, k: (0, k)),   # W1^T chunk
                pl.BlockSpec((1, tff), lambda i, k: (0, k)),       # b1 chunk
                pl.BlockSpec((tff, D_pad), lambda i, k: (k, 0)),   # W2^T chunk
                pl.BlockSpec((1, D_pad), lambda i, k: (0, 0)),     # b2 (full)
            ],
            out_specs=pl.BlockSpec((tm, D_pad), lambda i, k: (i, 0)),
            scratch_shapes=[pltpu.VMEM((tm, D_pad), jnp.float32)],
        ),
        compiler_params=pltpu.CompilerParams(
            dimension_semantics=("parallel", "arbitrary"),
            vmem_limit_bytes=48 * 1024 * 1024,
        ),
        cost_estimate=cost,
    )(x2d, w1_t, b1_2d, w2_t, b2_2d)

    return out2d[:M, :D].reshape(B, S, D)


def init_params(key, dff, inner_states, dtype=jnp.float32):
    """Deterministic init matching nn.Linear shapes (W: (out, in), b: (out,))."""
    k1, k2, k3, k4 = jax.random.split(key, 4)
    bound1 = 1.0 / (inner_states ** 0.5)
    bound2 = 1.0 / (dff ** 0.5)
    w1 = jax.random.uniform(k1, (dff, inner_states), dtype, -bound1, bound1)
    b1 = jax.random.uniform(k2, (dff,), dtype, -bound1, bound1)
    w2 = jax.random.uniform(k3, (inner_states, dff), dtype, -bound2, bound2)
    b2 = jax.random.uniform(k4, (inner_states,), dtype, -bound2, bound2)
    return w1, b1, w2, b2


if __name__ == "__main__":
    # Module defaults (inner_states=512, dff=2048) with a small batch/sequence.
    B, S = 2, 8
    inner_states, dff = 512, 2048

    key = jax.random.PRNGKey(0)
    kx, kp = jax.random.split(key)
    x = jax.random.normal(kx, (B, S, inner_states), jnp.float32)
    w1, b1, w2, b2 = init_params(kp, dff, inner_states)

    # jit the wrapper so the weight transposes / casts / padding are folded
    # once instead of re-materializing per call.
    ffn = jax.jit(feed_forward_layer)
    out = jax.block_until_ready(ffn(x, w1, b1, w2, b2))
    assert out.shape == (B, S, inner_states)

    # Reference mirroring the kernel numerics (bf16 operands, f32 accumulate).
    xb = x.reshape(-1, inner_states).astype(jnp.bfloat16)
    h = jnp.dot(xb, w1.T.astype(jnp.bfloat16),
                preferred_element_type=jnp.float32) + b1
    h = jnp.maximum(h, 0.0)
    ref = (jnp.dot(h.astype(jnp.bfloat16), w2.T.astype(jnp.bfloat16),
                   preferred_element_type=jnp.float32) + b2
           ).reshape(B, S, inner_states)
    assert jnp.allclose(out, ref, atol=2e-2, rtol=2e-2), \
        float(jnp.max(jnp.abs(out - ref)))

    # Loose sanity check against exact f32 math (the PyTorch forward).
    ref_f32 = jnp.maximum(x @ w1.T + b1, 0.0) @ w2.T + b2
    assert jnp.allclose(out, ref_f32, atol=1e-1, rtol=1e-1)

    print("KERNEL_OK")
</pallas_src>

<mosaic_0001>
module attributes {stable_mosaic.version = 11 : i64} {
  func.func @ffn_kernel(%arg0: i32, %arg1: i32, %arg2: memref<16x512xbf16, #tpu.memory_space<vmem>>, %arg3: memref<512x512xbf16, #tpu.memory_space<vmem>>, %arg4: memref<1x512xf32, #tpu.memory_space<vmem>>, %arg5: memref<512x512xbf16, #tpu.memory_space<vmem>>, %arg6: memref<1x512xf32, #tpu.memory_space<vmem>>, %arg7: memref<16x512xf32, #tpu.memory_space<vmem>>, %arg8: memref<16x512xf32, #tpu.memory_space<vmem>>) attributes {dimension_semantics = [#tpu.dimension_semantics<parallel>, #tpu.dimension_semantics<arbitrary>], iteration_bounds = array<i64: 1, 4>, scalar_prefetch = 0 : i64, scratch_operands = 1 : i64, tpu.core_type = #tpu.core_type<tc>, window_params = [{transform_indices = @transform_0, window_bounds = array<i64: 16, 512>}, {transform_indices = @transform_1, window_bounds = array<i64: 512, 512>}, {transform_indices = @transform_2, window_bounds = array<i64: 1, 512>}, {transform_indices = @transform_3, window_bounds = array<i64: 512, 512>}, {pipeline_mode = #tpu.pipeline_mode<synchronous>, transform_indices = @transform_4, window_bounds = array<i64: 1, 512>}, {transform_indices = @transform_5, window_bounds = array<i64: 16, 512>}]} {
    %c0_i32 = arith.constant 0 : i32
    %0 = arith.cmpi eq, %arg1, %c0_i32 : i32
    %1 = arith.extui %0 : i1 to i32
    %c0_i32_0 = arith.constant 0 : i32
    %2 = arith.cmpi ne, %1, %c0_i32_0 : i32
    scf.if %2 {
      %cst_15 = arith.constant 0.000000e+00 : f32
      %20 = vector.broadcast %cst_15 : f32 to vector<16x512xf32>
      %c0_16 = arith.constant 0 : index
      %c0_17 = arith.constant 0 : index
      %21 = vector.load %arg8[%c0_16, %c0_17] : memref<16x512xf32, #tpu.memory_space<vmem>>, vector<16x512xf32>
      tpu.vector_store %arg8[%c0_16, %c0_17], %20 {strides = array<i32>} : memref<16x512xf32, #tpu.memory_space<vmem>>, vector<16x512xf32>,
    } else {
    }
    %c0 = arith.constant 0 : index
    %c0_1 = arith.constant 0 : index
    %3 = vector.load %arg2[%c0, %c0_1] : memref<16x512xbf16, #tpu.memory_space<vmem>>, vector<16x512xbf16>
    %c0_2 = arith.constant 0 : index
    %c0_3 = arith.constant 0 : index
    %4 = vector.load %arg3[%c0_2, %c0_3] : memref<512x512xbf16, #tpu.memory_space<vmem>>, vector<512x512xbf16>
    %cst = arith.constant dense<0.000000e+00> : vector<16x512xf32>
    %5 = tpu.matmul %3, %4, %cst {dimension_numbers = #tpu.dot_dimension_numbers<[1], [0], [0], [1], [0, 0, 1, 1], [], []>} : vector<16x512xbf16>, vector<512x512xbf16>, vector<16x512xf32> -> vector<16x512xf32>
    %c0_4 = arith.constant 0 : index
    %c0_5 = arith.constant 0 : index
    %6 = vector.load %arg4[%c0_4, %c0_5] : memref<1x512xf32, #tpu.memory_space<vmem>>, vector<1x512xf32>
    %7 = vector.broadcast %6 : vector<1x512xf32> to vector<16x512xf32>
    %8 = arith.addf %5, %7 : vector<16x512xf32>
    %cst_6 = arith.constant 0.000000e+00 : f32
    %9 = vector.broadcast %cst_6 : f32 to vector<16x512xf32>
    %10 = arith.maximumf %8, %9 : vector<16x512xf32>
    %c0_7 = arith.constant 0 : index
    %c0_8 = arith.constant 0 : index
    %11 = vector.load %arg8[%c0_7, %c0_8] : memref<16x512xf32, #tpu.memory_space<vmem>>, vector<16x512xf32>
    %12 = arith.truncf %10 : vector<16x512xf32> to vector<16x512xbf16>
    %c0_9 = arith.constant 0 : index
    %c0_10 = arith.constant 0 : index
    %13 = vector.load %arg5[%c0_9, %c0_10] : memref<512x512xbf16, #tpu.memory_space<vmem>>, vector<512x512xbf16>
    %cst_11 = arith.constant dense<0.000000e+00> : vector<16x512xf32>
    %14 = tpu.matmul %12, %13, %cst_11 {dimension_numbers = #tpu.dot_dimension_numbers<[1], [0], [0], [1], [0, 0, 1, 1], [], []>} : vector<16x512xbf16>, vector<512x512xbf16>, vector<16x512xf32> -> vector<16x512xf32>
    %15 = arith.addf %11, %14 : vector<16x512xf32>
    %c0_12 = arith.constant 0 : index
    %c0_13 = arith.constant 0 : index
    %16 = vector.load %arg8[%c0_12, %c0_13] : memref<16x512xf32, #tpu.memory_space<vmem>>, vector<16x512xf32>
    tpu.vector_store %arg8[%c0_12, %c0_13], %15 {strides = array<i32>} : memref<16x512xf32, #tpu.memory_space<vmem>>, vector<16x512xf32>,
    %c3_i32 = arith.constant 3 : i32
    %17 = arith.cmpi eq, %arg1, %c3_i32 : i32
    %18 = arith.extui %17 : i1 to i32
    %c0_i32_14 = arith.constant 0 : i32
    %19 = arith.cmpi ne, %18, %c0_i32_14 : i32
    scf.if %19 {
      %c0_15 = arith.constant 0 : index
      %c0_16 = arith.constant 0 : index
      %20 = vector.load %arg8[%c0_15, %c0_16] : memref<16x512xf32, #tpu.memory_space<vmem>>, vector<16x512xf32>
      %c0_17 = arith.constant 0 : index
      %c0_18 = arith.constant 0 : index
      %21 = vector.load %arg6[%c0_17, %c0_18] : memref<1x512xf32, #tpu.memory_space<vmem>>, vector<1x512xf32>
      %22 = vector.broadcast %21 : vector<1x512xf32> to vector<16x512xf32>
      %23 = arith.addf %20, %22 : vector<16x512xf32>
      %c0_19 = arith.constant 0 : index
      %c0_20 = arith.constant 0 : index
      %24 = vector.load %arg7[%c0_19, %c0_20] : memref<16x512xf32, #tpu.memory_space<vmem>>, vector<16x512xf32>
      tpu.vector_store %arg7[%c0_19, %c0_20], %23 {strides = array<i32>} : memref<16x512xf32, #tpu.memory_space<vmem>>, vector<16x512xf32>,
    } else {
    }
    return
  }
  func.func @transform_0(%arg0: i32, %arg1: i32) -> (i32, i32) {
    %c0_i32 = arith.constant 0 : i32
    %c0_i32_0 = arith.constant 0 : i32
    return %arg0, %c0_i32 : i32, i32
  }
  func.func @transform_1(%arg0: i32, %arg1: i32) -> (i32, i32) {
    %c0_i32 = arith.constant 0 : i32
    %c0_i32_0 = arith.constant 0 : i32
    return %c0_i32, %arg1 : i32, i32
  }
  func.func @transform_2(%arg0: i32, %arg1: i32) -> (i32, i32) {
    %c0_i32 = arith.constant 0 : i32
    %c0_i32_0 = arith.constant 0 : i32
    return %c0_i32, %arg1 : i32, i32
  }
  func.func @transform_3(%arg0: i32, %arg1: i32) -> (i32, i32) {
    %c0_i32 = arith.constant 0 : i32
    %c0_i32_0 = arith.constant 0 : i32
    return %arg1, %c0_i32 : i32, i32
  }
  func.func @transform_4(%arg0: i32, %arg1: i32) -> (i32, i32) {
    %c0_i32 = arith.constant 0 : i32
    %c0_i32_0 = arith.constant 0 : i32
    %c0_i32_1 = arith.constant 0 : i32
    return %c0_i32, %c0_i32_0 : i32, i32
  }
  func.func @transform_5(%arg0: i32, %arg1: i32) -> (i32, i32) {
    %c0_i32 = arith.constant 0 : i32
    %c0_i32_0 = arith.constant 0 : i32
    return %arg0, %c0_i32 : i32, i32
  }
}

</mosaic_0001>

<bundles_post_ra>
// kernel: feed_forward_layer.1
= control target key start
LH: loop header
LB: loop body
LE: loop exit
PB: predicated region body
PF: predicated region fallthrough
CT: control target
= control target key end

     0   :  { %10 = vsyncpa [#allocation5], 0  ;;  %s3551_s18 = smov 0   ;;  %s3553_s19 = smov 0   ;;  %s4220_s0 = inlined_call_operand.vmem [shape: bf16[16,512], index: 0, kind: input, shape index: {}]   ;;  %s4221_s1 = inlined_call_operand.vmem [shape: bf16[512,2048], index: 1, kind: input, shape index: {}]   ;;  %s4222_s2 = inlined_call_operand.vmem [shape: f32[1,2048], index: 2, kind: input, shape index: {}]   ;;  %s4223_s3 = inlined_call_operand.vmem [shape: bf16[2048,512], index: 3, kind: input, shape index: {}]   ;;  %s4224_s4 = inlined_call_operand.vmem [shape: f32[1,512], index: 4, kind: input, shape index: {}]   ;;  %s4225_s5 = inlined_call_operand.hbm [shape: f32[16,512], index: 5, kind: output, shape index: {}]  }
   0x1   :  { %s3555_s20 = smov 0   ;;  %s3557_s21 = smov 0  }
   0x2   :  { %s3559_s22 = smov 0  }
   0x3 LB: > { %s2702_s23 = sadd.s32 4294967295, %s3515_s22   ;;  %s25_s24 = sadd.s32 1, %s3511_s21  ;;  %s3515_s22 = sphi %s3559_s22, %s16_s22   ;;  %s3511_s21 = sphi %s3557_s21, %s4230_s21   ;;  %s3507_s20 = sphi %s3555_s20, %s4229_s20   ;;  %s3503_s19 = sphi %s3553_s19, %s4228_s19   ;;  %s3499_s18 = sphi %s3551_s18, %s4227_s18  }
   0x4   : > { %p26_p0 = scmp.ge.s32.totalorder %s25_s24, 4  ;;  %p68_p1 = scmp.ne.s32.totalorder %s3503_s19, %s3499_s18 }
   0x5   : > { %p69_p2 = scmp.eq.s32.totalorder %s3515_s22, 0  ;;  %s61_s26 = sadd.s32 1, %s3503_s19 }
   0x6   : > { %s4232_s24 = smov (%p26_p0, %s25_s24), 0  ;;  %p2705_p5 = scmp.ge.s32.totalorder %s3515_s22, 4 }
   0x7   : > { %p70_p3 = por %p69_p2, %p68_p1  ;;  %s58_s25 = ssub.s32 %s3511_s21, %s4232_s24 }
   0x8   : > { %p59_p4 = scmp.eq.s32.totalorder %s58_s25, 0  ;;  %206 = sbr.rel (%p2705_p5) target bundleno = 83 (0x53), region = 24 }
   0xa   : > { %s3587_s27 = scalar_select %p59_p4, %s3503_s19, %s61_s26  }
   0xf   : > { %209 = sbr.rel (!%p70_p3) target bundleno = 83 (0x53), region = 28  ;;  %s211_s28 = sand.u32 (%p70_p3), 1, %s3503_s19  }
  0x10   : > { %s2981_s29 = sshll.u32 (%p70_p3), %s3511_s21, 4  ;;  %s2706_s30 = sshll.u32 (%p70_p3), %s211_s28, 10 }
  0x11   : > { %s3595_s8 = scalar_lea.vmem (%p70_p3), %s4221_s1, %s2981_s29  ;;  %s3600_s9 = scalar_lea.vmem (%p70_p3), [#allocation3], %s2706_s30 }
  0x12   : > { %v229_v0 = vld [vmem:[%s3595_s8] sm:$0xff] (%p70_p3)  ;;  %v231_v1 = vld [vmem:[%s3595_s8 + $0x8] sm:$0xff] (%p70_p3) }
  0x13   : > { %v233_v2 = vld [vmem:[%s3595_s8 + $0x40] sm:$0xff] (%p70_p3)  ;;  %230 = vst [vmem:[%s3600_s9] sm:$0xff] (%p70_p3), %v229_v0  ;;  %232 = vst [vmem:[%s3600_s9 + $0x8] sm:$0xff] (%p70_p3), %v231_v1  ;;  %v235_v3 = vld [vmem:[%s3595_s8 + $0x48] sm:$0xff] (%p70_p3) }
  0x14   : > { %234 = vst [vmem:[%s3600_s9 + $0x10] sm:$0xff] (%p70_p3), %v233_v2  ;;  %v237_v4 = vld [vmem:[%s3595_s8 + $0x80] sm:$0xff] (%p70_p3)  ;;  %v239_v5 = vld [vmem:[%s3595_s8 + $0x88] sm:$0xff] (%p70_p3)  ;;  %236 = vst [vmem:[%s3600_s9 + $0x18] sm:$0xff] (%p70_p3), %v235_v3 }
  0x15   : > { %238 = vst [vmem:[%s3600_s9 + $0x20] sm:$0xff] (%p70_p3), %v237_v4  ;;  %240 = vst [vmem:[%s3600_s9 + $0x28] sm:$0xff] (%p70_p3), %v239_v5  ;;  %v241_v6 = vld [vmem:[%s3595_s8 + $0xc0] sm:$0xff] (%p70_p3)  ;;  %v243_v7 = vld [vmem:[%s3595_s8 + $0xc8] sm:$0xff] (%p70_p3) }
  0x16   : > { %v245_v8 = vld [vmem:[%s3595_s8 + $0x100] sm:$0xff]  ;;  %242 = vst [vmem:[%s3600_s9 + $0x30] sm:$0xff] %v241_v6  ;;  %244 = vst [vmem:[%s3600_s9 + $0x38] sm:$0xff] %v243_v7  ;;  %v247_v9 = vld [vmem:[%s3595_s8 + $0x108] sm:$0xff] }
  0x17   : > { %246 = vst [vmem:[%s3600_s9 + $0x40] sm:$0xff] %v245_v8  ;;  %v249_v10 = vld [vmem:[%s3595_s8 + $0x140] sm:$0xff]  ;;  %v251_v11 = vld [vmem:[%s3595_s8 + $0x148] sm:$0xff]  ;;  %248 = vst [vmem:[%s3600_s9 + $0x48] sm:$0xff] %v247_v9 }
  0x18   : > { %250 = vst [vmem:[%s3600_s9 + $0x50] sm:$0xff] %v249_v10  ;;  %252 = vst [vmem:[%s3600_s9 + $0x58] sm:$0xff] %v251_v11  ;;  %v253_v12 = vld [vmem:[%s3595_s8 + $0x180] sm:$0xff]  ;;  %v255_v13 = vld [vmem:[%s3595_s8 + $0x188] sm:$0xff] }
  0x19   : > { %v257_v14 = vld [vmem:[%s3595_s8 + $0x1c0] sm:$0xff]  ;;  %254 = vst [vmem:[%s3600_s9 + $0x60] sm:$0xff] %v253_v12  ;;  %256 = vst [vmem:[%s3600_s9 + $0x68] sm:$0xff] %v255_v13  ;;  %v259_v15 = vld [vmem:[%s3595_s8 + $0x1c8] sm:$0xff] }
  0x1a   : > { %258 = vst [vmem:[%s3600_s9 + $0x70] sm:$0xff] %v257_v14  ;;  %v261_v16 = vld [vmem:[%s3595_s8 + $0x200] sm:$0xff]  ;;  %v263_v17 = vld [vmem:[%s3595_s8 + $0x208] sm:$0xff]  ;;  %260 = vst [vmem:[%s3600_s9 + $0x78] sm:$0xff] %v259_v15 }
  0x1b   : > { %262 = vst [vmem:[%s3600_s9 + $0x80] sm:$0xff] %v261_v16  ;;  %264 = vst [vmem:[%s3600_s9 + $0x88] sm:$0xff] %v263_v17  ;;  %v265_v18 = vld [vmem:[%s3595_s8 + $0x240] sm:$0xff]  ;;  %v267_v19 = vld [vmem:[%s3595_s8 + $0x248] sm:$0xff] }
  0x1c   : > { %v269_v20 = vld [vmem:[%s3595_s8 + $0x280] sm:$0xff]  ;;  %266 = vst [vmem:[%s3600_s9 + $0x90] sm:$0xff] %v265_v18  ;;  %268 = vst [vmem:[%s3600_s9 + $0x98] sm:$0xff] %v267_v19  ;;  %v271_v21 = vld [vmem:[%s3595_s8 + $0x288] sm:$0xff] }
  0x1d   : > { %270 = vst [vmem:[%s3600_s9 + $0xa0] sm:$0xff] %v269_v20  ;;  %v273_v22 = vld [vmem:[%s3595_s8 + $0x2c0] sm:$0xff]  ;;  %v275_v23 = vld [vmem:[%s3595_s8 + $0x2c8] sm:$0xff]  ;;  %272 = vst [vmem:[%s3600_s9 + $0xa8] sm:$0xff] %v271_v21 }
  0x1e   : > { %274 = vst [vmem:[%s3600_s9 + $0xb0] sm:$0xff] %v273_v22  ;;  %276 = vst [vmem:[%s3600_s9 + $0xb8] sm:$0xff] %v275_v23  ;;  %v277_v24 = vld [vmem:[%s3595_s8 + $0x300] sm:$0xff]  ;;  %v279_v25 = vld [vmem:[%s3595_s8 + $0x308] sm:$0xff] }
  0x1f   : > { %v281_v26 = vld [vmem:[%s3595_s8 + $0x340] sm:$0xff]  ;;  %278 = vst [vmem:[%s3600_s9 + $0xc0] sm:$0xff] %v277_v24  ;;  %280 = vst [vmem:[%s3600_s9 + $0xc8] sm:$0xff] %v279_v25  ;;  %v283_v27 = vld [vmem:[%s3595_s8 + $0x348] sm:$0xff] }
  0x20   : > { %282 = vst [vmem:[%s3600_s9 + $0xd0] sm:$0xff] %v281_v26  ;;  %v285_v28 = vld [vmem:[%s3595_s8 + $0x380] sm:$0xff]  ;;  %v287_v29 = vld [vmem:[%s3595_s8 + $0x388] sm:$0xff]  ;;  %284 = vst [vmem:[%s3600_s9 + $0xd8] sm:$0xff] %v283_v27 }
  0x21   : > { %286 = vst [vmem:[%s3600_s9 + $0xe0] sm:$0xff] %v285_v28  ;;  %288 = vst [vmem:[%s3600_s9 + $0xe8] sm:$0xff] %v287_v29  ;;  %v289_v30 = vld [vmem:[%s3595_s8 + $0x3c0] sm:$0xff]  ;;  %v291_v31 = vld [vmem:[%s3595_s8 + $0x3c8] sm:$0xff] }
  0x22   : > { %v293_v32 = vld [vmem:[%s3595_s8 + $0x400] sm:$0xff]  ;;  %290 = vst [vmem:[%s3600_s9 + $0xf0] sm:$0xff] %v289_v30  ;;  %292 = vst [vmem:[%s3600_s9 + $0xf8] sm:$0xff] %v291_v31  ;;  %v295_v33 = vld [vmem:[%s3595_s8 + $0x408] sm:$0xff] }
  0x23   : > { %294 = vst [vmem:[%s3600_s9 + $0x100] sm:$0xff] %v293_v32  ;;  %v297_v34 = vld [vmem:[%s3595_s8 + $0x440] sm:$0xff]  ;;  %v299_v35 = vld [vmem:[%s3595_s8 + $0x448] sm:$0xff]  ;;  %296 = vst [vmem:[%s3600_s9 + $0x108] sm:$0xff] %v295_v33 }
  0x24   : > { %298 = vst [vmem:[%s3600_s9 + $0x110] sm:$0xff] %v297_v34  ;;  %300 = vst [vmem:[%s3600_s9 + $0x118] sm:$0xff] %v299_v35  ;;  %v301_v36 = vld [vmem:[%s3595_s8 + $0x480] sm:$0xff]  ;;  %v303_v37 = vld [vmem:[%s3595_s8 + $0x488] sm:$0xff] }
  0x25   : > { %v305_v38 = vld [vmem:[%s3595_s8 + $0x4c0] sm:$0xff]  ;;  %302 = vst [vmem:[%s3600_s9 + $0x120] sm:$0xff] %v301_v36  ;;  %304 = vst [vmem:[%s3600_s9 + $0x128] sm:$0xff] %v303_v37  ;;  %v307_v39 = vld [vmem:[%s3595_s8 + $0x4c8] sm:$0xff] }
  0x26   : > { %306 = vst [vmem:[%s3600_s9 + $0x130] sm:$0xff] %v305_v38  ;;  %v309_v40 = vld [vmem:[%s3595_s8 + $0x500] sm:$0xff]  ;;  %v311_v41 = vld [vmem:[%s3595_s8 + $0x508] sm:$0xff]  ;;  %308 = vst [vmem:[%s3600_s9 + $0x138] sm:$0xff] %v307_v39 }
  0x27   : > { %310 = vst [vmem:[%s3600_s9 + $0x140] sm:$0xff] %v309_v40  ;;  %312 = vst [vmem:[%s3600_s9 + $0x148] sm:$0xff] %v311_v41  ;;  %v313_v42 = vld [vmem:[%s3595_s8 + $0x540] sm:$0xff]  ;;  %v315_v43 = vld [vmem:[%s3595_s8 + $0x548] sm:$0xff] }
  0x28   : > { %v317_v44 = vld [vmem:[%s3595_s8 + $0x580] sm:$0xff]  ;;  %314 = vst [vmem:[%s3600_s9 + $0x150] sm:$0xff] %v313_v42  ;;  %316 = vst [vmem:[%s3600_s9 + $0x158] sm:$0xff] %v315_v43  ;;  %v319_v45 = vld [vmem:[%s3595_s8 + $0x588] sm:$0xff] }
  0x29   : > { %318 = vst [vmem:[%s3600_s9 + $0x160] sm:$0xff] %v317_v44  ;;  %v321_v46 = vld [vmem:[%s3595_s8 + $0x5c0] sm:$0xff]  ;;  %v323_v47 = vld [vmem:[%s3595_s8 + $0x5c8] sm:$0xff]  ;;  %320 = vst [vmem:[%s3600_s9 + $0x168] sm:$0xff] %v319_v45 }
  0x2a   : > { %322 = vst [vmem:[%s3600_s9 + $0x170] sm:$0xff] %v321_v46  ;;  %324 = vst [vmem:[%s3600_s9 + $0x178] sm:$0xff] %v323_v47  ;;  %v325_v48 = vld [vmem:[%s3595_s8 + $0x600] sm:$0xff]  ;;  %v327_v49 = vld [vmem:[%s3595_s8 + $0x608] sm:$0xff] }
  0x2b   : > { %v329_v50 = vld [vmem:[%s3595_s8 + $0x640] sm:$0xff]  ;;  %326 = vst [vmem:[%s3600_s9 + $0x180] sm:$0xff] %v325_v48  ;;  %328 = vst [vmem:[%s3600_s9 + $0x188] sm:$0xff] %v327_v49  ;;  %v331_v51 = vld [vmem:[%s3595_s8 + $0x648] sm:$0xff] }
  0x2c   : > { %330 = vst [vmem:[%s3600_s9 + $0x190] sm:$0xff] %v329_v50  ;;  %v333_v52 = vld [vmem:[%s3595_s8 + $0x680] sm:$0xff]  ;;  %v335_v53 = vld [vmem:[%s3595_s8 + $0x688] sm:$0xff]  ;;  %332 = vst [vmem:[%s3600_s9 + $0x198] sm:$0xff] %v331_v51 }
  0x2d   : > { %334 = vst [vmem:[%s3600_s9 + $0x1a0] sm:$0xff] %v333_v52  ;;  %336 = vst [vmem:[%s3600_s9 + $0x1a8] sm:$0xff] %v335_v53  ;;  %v337_v54 = vld [vmem:[%s3595_s8 + $0x6c0] sm:$0xff]  ;;  %v339_v55 = vld [vmem:[%s3595_s8 + $0x6c8] sm:$0xff] }
  0x2e   : > { %v341_v56 = vld [vmem:[%s3595_s8 + $0x700] sm:$0xff]  ;;  %338 = vst [vmem:[%s3600_s9 + $0x1b0] sm:$0xff] %v337_v54  ;;  %340 = vst [vmem:[%s3600_s9 + $0x1b8] sm:$0xff] %v339_v55  ;;  %v343_v57 = vld [vmem:[%s3595_s8 + $0x708] sm:$0xff] }
  0x2f   : > { %342 = vst [vmem:[%s3600_s9 + $0x1c0] sm:$0xff] %v341_v56  ;;  %v345_v58 = vld [vmem:[%s3595_s8 + $0x740] sm:$0xff]  ;;  %v347_v59 = vld [vmem:[%s3595_s8 + $0x748] sm:$0xff]  ;;  %344 = vst [vmem:[%s3600_s9 + $0x1c8] sm:$0xff] %v343_v57 }
  0x30   : > { %346 = vst [vmem:[%s3600_s9 + $0x1d0] sm:$0xff] %v345_v58  ;;  %348 = vst [vmem:[%s3600_s9 + $0x1d8] sm:$0xff] %v347_v59  ;;  %v349_v60 = vld [vmem:[%s3595_s8 + $0x780] sm:$0xff]  ;;  %v351_v61 = vld [vmem:[%s3595_s8 + $0x788] sm:$0xff] }
  0x31   : > { %v353_v62 = vld [vmem:[%s3595_s8 + $0x7c0] sm:$0xff]  ;;  %350 = vst [vmem:[%s3600_s9 + $0x1e0] sm:$0xff] %v349_v60  ;;  %352 = vst [vmem:[%s3600_s9 + $0x1e8] sm:$0xff] %v351_v61  ;;  %v355_v63 = vld [vmem:[%s3595_s8 + $0x7c8] sm:$0xff] }
  0x32   : > { %354 = vst [vmem:[%s3600_s9 + $0x1f0] sm:$0xff] %v353_v62  ;;  %v357_v0 = vld [vmem:[%s3595_s8 + $0x800] sm:$0xff]  ;;  %v359_v1 = vld [vmem:[%s3595_s8 + $0x808] sm:$0xff]  ;;  %356 = vst [vmem:[%s3600_s9 + $0x1f8] sm:$0xff] %v355_v63 }
  0x33   : > { %358 = vst [vmem:[%s3600_s9 + $0x200] sm:$0xff] %v357_v0  ;;  %360 = vst [vmem:[%s3600_s9 + $0x208] sm:$0xff] %v359_v1  ;;  %v361_v2 = vld [vmem:[%s3595_s8 + $0x840] sm:$0xff]  ;;  %v363_v3 = vld [vmem:[%s3595_s8 + $0x848] sm:$0xff] }
  0x34   : > { %v365_v4 = vld [vmem:[%s3595_s8 + $0x880] sm:$0xff]  ;;  %362 = vst [vmem:[%s3600_s9 + $0x210] sm:$0xff] %v361_v2  ;;  %364 = vst [vmem:[%s3600_s9 + $0x218] sm:$0xff] %v363_v3  ;;  %v367_v5 = vld [vmem:[%s3595_s8 + $0x888] sm:$0xff] }
  0x35   : > { %366 = vst [vmem:[%s3600_s9 + $0x220] sm:$0xff] %v365_v4  ;;  %v369_v6 = vld [vmem:[%s3595_s8 + $0x8c0] sm:$0xff]  ;;  %v371_v7 = vld [vmem:[%s3595_s8 + $0x8c8] sm:$0xff]  ;;  %368 = vst [vmem:[%s3600_s9 + $0x228] sm:$0xff] %v367_v5 }
  0x36   : > { %370 = vst [vmem:[%s3600_s9 + $0x230] sm:$0xff] %v369_v6  ;;  %372 = vst [vmem:[%s3600_s9 + $0x238] sm:$0xff] %v371_v7  ;;  %v373_v8 = vld [vmem:[%s3595_s8 + $0x900] sm:$0xff]  ;;  %v375_v9 = vld [vmem:[%s3595_s8 + $0x908] sm:$0xff] }
  0x37   : > { %v377_v10 = vld [vmem:[%s3595_s8 + $0x940] sm:$0xff]  ;;  %374 = vst [vmem:[%s3600_s9 + $0x240] sm:$0xff] %v373_v8  ;;  %376 = vst [vmem:[%s3600_s9 + $0x248] sm:$0xff] %v375_v9  ;;  %v379_v11 = vld [vmem:[%s3595_s8 + $0x948] sm:$0xff] }
  0x38   : > { %378 = vst [vmem:[%s3600_s9 + $0x250] sm:$0xff] %v377_v10  ;;  %v381_v12 = vld [vmem:[%s3595_s8 + $0x980] sm:$0xff]  ;;  %v383_v13 = vld [vmem:[%s3595_s8 + $0x988] sm:$0xff]  ;;  %380 = vst [vmem:[%s3600_s9 + $0x258] sm:$0xff] %v379_v11 }
  0x39   : > { %382 = vst [vmem:[%s3600_s9 + $0x260] sm:$0xff] %v381_v12  ;;  %384 = vst [vmem:[%s3600_s9 + $0x268] sm:$0xff] %v383_v13  ;;  %v385_v14 = vld [vmem:[%s3595_s8 + $0x9c0] sm:$0xff]  ;;  %v387_v15 = vld [vmem:[%s3595_s8 + $0x9c8] sm:$0xff] }
  0x3a   : > { %v389_v16 = vld [vmem:[%s3595_s8 + $0xa00] sm:$0xff]  ;;  %386 = vst [vmem:[%s3600_s9 + $0x270] sm:$0xff] %v385_v14  ;;  %388 = vst [vmem:[%s3600_s9 + $0x278] sm:$0xff] %v387_v15  ;;  %v391_v17 = vld [vmem:[%s3595_s8 + $0xa08] sm:$0xff] }
  0x3b   : > { %390 = vst [vmem:[%s3600_s9 + $0x280] sm:$0xff] %v389_v16  ;;  %v393_v18 = vld [vmem:[%s3595_s8 + $0xa40] sm:$0xff]  ;;  %v395_v19 = vld [vmem:[%s3595_s8 + $0xa48] sm:$0xff]  ;;  %392 = vst [vmem:[%s3600_s9 + $0x288] sm:$0xff] %v391_v17 }
  0x3c   : > { %394 = vst [vmem:[%s3600_s9 + $0x290] sm:$0xff] %v393_v18  ;;  %396 = vst [vmem:[%s3600_s9 + $0x298] sm:$0xff] %v395_v19  ;;  %v397_v20 = vld [vmem:[%s3595_s8 + $0xa80] sm:$0xff]  ;;  %v399_v21 = vld [vmem:[%s3595_s8 + $0xa88] sm:$0xff] }
  0x3d   : > { %v401_v22 = vld [vmem:[%s3595_s8 + $0xac0] sm:$0xff]  ;;  %398 = vst [vmem:[%s3600_s9 + $0x2a0] sm:$0xff] %v397_v20  ;;  %400 = vst [vmem:[%s3600_s9 + $0x2a8] sm:$0xff] %v399_v21  ;;  %v403_v23 = vld [vmem:[%s3595_s8 + $0xac8] sm:$0xff] }
  0x3e   : > { %402 = vst [vmem:[%s3600_s9 + $0x2b0] sm:$0xff] %v401_v22  ;;  %v405_v24 = vld [vmem:[%s3595_s8 + $0xb00] sm:$0xff]  ;;  %v407_v25 = vld [vmem:[%s3595_s8 + $0xb08] sm:$0xff]  ;;  %404 = vst [vmem:[%s3600_s9 + $0x2b8] sm:$0xff] %v403_v23 }
  0x3f   : > { %406 = vst [vmem:[%s3600_s9 + $0x2c0] sm:$0xff] %v405_v24  ;;  %408 = vst [vmem:[%s3600_s9 + $0x2c8] sm:$0xff] %v407_v25  ;;  %v409_v26 = vld [vmem:[%s3595_s8 + $0xb40] sm:$0xff]  ;;  %v411_v27 = vld [vmem:[%s3595_s8 + $0xb48] sm:$0xff] }
  0x40   : > { %v413_v28 = vld [vmem:[%s3595_s8 + $0xb80] sm:$0xff]  ;;  %410 = vst [vmem:[%s3600_s9 + $0x2d0] sm:$0xff] %v409_v26  ;;  %412 = vst [vmem:[%s3600_s9 + $0x2d8] sm:$0xff] %v411_v27  ;;  %v415_v29 = vld [vmem:[%s3595_s8 + $0xb88] sm:$0xff] }
  0x41   : > { %414 = vst [vmem:[%s3600_s9 + $0x2e0] sm:$0xff] %v413_v28  ;;  %v417_v30 = vld [vmem:[%s3595_s8 + $0xbc0] sm:$0xff]  ;;  %v419_v31 = vld [vmem:[%s3595_s8 + $0xbc8] sm:$0xff]  ;;  %416 = vst [vmem:[%s3600_s9 + $0x2e8] sm:$0xff] %v415_v29 }
  0x42   : > { %418 = vst [vmem:[%s3600_s9 + $0x2f0] sm:$0xff] %v417_v30  ;;  %420 = vst [vmem:[%s3600_s9 + $0x2f8] sm:$0xff] %v419_v31  ;;  %v421_v32 = vld [vmem:[%s3595_s8 + $0xc00] sm:$0xff]  ;;  %v423_v33 = vld [vmem:[%s3595_s8 + $0xc08] sm:$0xff] }
  0x43   : > { %v425_v34 = vld [vmem:[%s3595_s8 + $0xc40] sm:$0xff]  ;;  %422 = vst [vmem:[%s3600_s9 + $0x300] sm:$0xff] %v421_v32  ;;  %424 = vst [vmem:[%s3600_s9 + $0x308] sm:$0xff] %v423_v33  ;;  %v427_v35 = vld [vmem:[%s3595_s8 + $0xc48] sm:$0xff] }
  0x44   : > { %426 = vst [vmem:[%s3600_s9 + $0x310] sm:$0xff] %v425_v34  ;;  %v429_v36 = vld [vmem:[%s3595_s8 + $0xc80] sm:$0xff]  ;;  %v431_v37 = vld [vmem:[%s3595_s8 + $0xc88] sm:$0xff]  ;;  %428 = vst [vmem:[%s3600_s9 + $0x318] sm:$0xff] %v427_v35 }
  0x45   : > { %430 = vst [vmem:[%s3600_s9 + $0x320] sm:$0xff] %v429_v36  ;;  %432 = vst [vmem:[%s3600_s9 + $0x328] sm:$0xff] %v431_v37  ;;  %v433_v38 = vld [vmem:[%s3595_s8 + $0xcc0] sm:$0xff]  ;;  %v435_v39 = vld [vmem:[%s3595_s8 + $0xcc8] sm:$0xff] }
  0x46   : > { %v437_v40 = vld [vmem:[%s3595_s8 + $0xd00] sm:$0xff]  ;;  %434 = vst [vmem:[%s3600_s9 + $0x330] sm:$0xff] %v433_v38  ;;  %436 = vst [vmem:[%s3600_s9 + $0x338] sm:$0xff] %v435_v39  ;;  %v439_v41 = vld [vmem:[%s3595_s8 + $0xd08] sm:$0xff] }
  0x47   : > { %438 = vst [vmem:[%s3600_s9 + $0x340] sm:$0xff] %v437_v40  ;;  %v441_v42 = vld [vmem:[%s3595_s8 + $0xd40] sm:$0xff]  ;;  %v443_v43 = vld [vmem:[%s3595_s8 + $0xd48] sm:$0xff]  ;;  %440 = vst [vmem:[%s3600_s9 + $0x348] sm:$0xff] %v439_v41 }
  0x48   : > { %442 = vst [vmem:[%s3600_s9 + $0x350] sm:$0xff] %v441_v42  ;;  %444 = vst [vmem:[%s3600_s9 + $0x358] sm:$0xff] %v443_v43  ;;  %v445_v44 = vld [vmem:[%s3595_s8 + $0xd80] sm:$0xff]  ;;  %v447_v45 = vld [vmem:[%s3595_s8 + $0xd88] sm:$0xff] }
  0x49   : > { %v449_v46 = vld [vmem:[%s3595_s8 + $0xdc0] sm:$0xff]  ;;  %446 = vst [vmem:[%s3600_s9 + $0x360] sm:$0xff] %v445_v44  ;;  %448 = vst [vmem:[%s3600_s9 + $0x368] sm:$0xff] %v447_v45  ;;  %v451_v47 = vld [vmem:[%s3595_s8 + $0xdc8] sm:$0xff] }
  0x4a   : > { %450 = vst [vmem:[%s3600_s9 + $0x370] sm:$0xff] %v449_v46  ;;  %v453_v48 = vld [vmem:[%s3595_s8 + $0xe00] sm:$0xff]  ;;  %v455_v49 = vld [vmem:[%s3595_s8 + $0xe08] sm:$0xff]  ;;  %452 = vst [vmem:[%s3600_s9 + $0x378] sm:$0xff] %v451_v47 }
  0x4b   : > { %454 = vst [vmem:[%s3600_s9 + $0x380] sm:$0xff] %v453_v48  ;;  %456 = vst [vmem:[%s3600_s9 + $0x388] sm:$0xff] %v455_v49  ;;  %v457_v50 = vld [vmem:[%s3595_s8 + $0xe40] sm:$0xff]  ;;  %v459_v51 = vld [vmem:[%s3595_s8 + $0xe48] sm:$0xff] }
  0x4c   : > { %v461_v52 = vld [vmem:[%s3595_s8 + $0xe80] sm:$0xff]  ;;  %458 = vst [vmem:[%s3600_s9 + $0x390] sm:$0xff] %v457_v50  ;;  %460 = vst [vmem:[%s3600_s9 + $0x398] sm:$0xff] %v459_v51  ;;  %v463_v53 = vld [vmem:[%s3595_s8 + $0xe88] sm:$0xff] }
  0x4d   : > { %462 = vst [vmem:[%s3600_s9 + $0x3a0] sm:$0xff] %v461_v52  ;;  %v465_v54 = vld [vmem:[%s3595_s8 + $0xec0] sm:$0xff]  ;;  %v467_v55 = vld [vmem:[%s3595_s8 + $0xec8] sm:$0xff]  ;;  %464 = vst [vmem:[%s3600_s9 + $0x3a8] sm:$0xff] %v463_v53 }
  0x4e   : > { %466 = vst [vmem:[%s3600_s9 + $0x3b0] sm:$0xff] %v465_v54  ;;  %468 = vst [vmem:[%s3600_s9 + $0x3b8] sm:$0xff] %v467_v55  ;;  %v469_v56 = vld [vmem:[%s3595_s8 + $0xf00] sm:$0xff]  ;;  %v471_v57 = vld [vmem:[%s3595_s8 + $0xf08] sm:$0xff] }
  0x4f   : > { %v473_v58 = vld [vmem:[%s3595_s8 + $0xf40] sm:$0xff]  ;;  %470 = vst [vmem:[%s3600_s9 + $0x3c0] sm:$0xff] %v469_v56  ;;  %472 = vst [vmem:[%s3600_s9 + $0x3c8] sm:$0xff] %v471_v57  ;;  %v475_v59 = vld [vmem:[%s3595_s8 + $0xf48] sm:$0xff] }
  0x50   : > { %474 = vst [vmem:[%s3600_s9 + $0x3d0] sm:$0xff] %v473_v58  ;;  %v477_v60 = vld [vmem:[%s3595_s8 + $0xf80] sm:$0xff]  ;;  %v479_v61 = vld [vmem:[%s3595_s8 + $0xf88] sm:$0xff]  ;;  %476 = vst [vmem:[%s3600_s9 + $0x3d8] sm:$0xff] %v475_v59 }
  0x51   : > { %478 = vst [vmem:[%s3600_s9 + $0x3e0] sm:$0xff] %v477_v60  ;;  %480 = vst [vmem:[%s3600_s9 + $0x3e8] sm:$0xff] %v479_v61  ;;  %v481_v62 = vld [vmem:[%s3595_s8 + $0xfc0] sm:$0xff]  ;;  %v483_v63 = vld [vmem:[%s3595_s8 + $0xfc8] sm:$0xff] }
  0x52   : > { %482 = vst [vmem:[%s3600_s9 + $0x3f0] sm:$0xff] %v481_v62  ;;  %484 = vst [vmem:[%s3600_s9 + $0x3f8] sm:$0xff] %v483_v63 }
  0x53 PF: > { %p2709_p6 = scmp.ge.s32.totalorder %s3515_s22, 1  ;;  %p507_p7 = scmp.lt.s32.totalorder %s3515_s22, 5 }
  0x55   : > { %p508_p8 = pnand %p2709_p6, %p507_p7 }
  0x56   : > { %s514_s10 = sand.u32 (!%p508_p8), 1, %s3499_s18   ;;  %s2711_s11 = sshll.u32 (!%p508_p8), %s3507_s20, 2 }
  0x57   : > { %511 = sbr.rel (%p508_p8) target bundleno = 772 (0x304), region = 59  ;;  %s2710_s12 = sshll.u32 (!%p508_p8), %s514_s10, 10 }
  0x58   : > { %p561_p9 = scmp.lt.s32.totalorder (!%p508_p8), %s2711_s11, 15  ;;  %s2712_s13 = sshll.u32 (!%p508_p8), %s3507_s20, 6 }
  0x59   : > { %p566_p10 = scmp.lt.s32.totalorder (!%p508_p8), %s2712_s13, 255  ;;  %s3871_s18 = scalar_lea.vmem (!%p508_p8), [#allocation3], %s2710_s12 }
  0x5a   : > { %p2715_p11 = scmp.ne.s32.totalorder (!%p508_p8), %s3507_s20, 0 }
  0x5e   : > { %s4234_s11 = smov (!%p561_p9, %s2711_s11), 15  ;;  %s4236_s13 = smov (!%p566_p10, %s2712_s13), 255 }
  0x5f   : > { %s563_s16 = scalar_lea.vmem %s4222_s2, %s4234_s11  ;;  %s2982_s17 = sshll.u32 %s4236_s13, 4  ;;  %v3517_v0 = vmov (!%p2715_p11), 0.0  }
  0x60   : > { %s3869_s28 = scalar_lea.vmem %s4223_s3, %s2982_s17  ;;  %576 = sbr.rel (%p2715_p11) target bundleno = 103 (0x67), region = 67  ;;  %577 = vst [vmem:[#allocation2] sm:$0xff] (!%p2715_p11), %v3517_v0  ;;  %578 = vst [vmem:[#allocation2 + $0x8] sm:$0xff] (!%p2715_p11), %v3517_v0 }
  0x61   : > { %579 = vst [vmem:[#allocation2 + $0x10] sm:$0xff] (!%p2715_p11), %v3517_v0  ;;  %580 = vst [vmem:[#allocation2 + $0x18] sm:$0xff] (!%p2715_p11), %v3517_v0 }
  0x62   : > { %581 = vst [vmem:[#allocation2 + $0x20] sm:$0xff] (!%p2715_p11), %v3517_v0  ;;  %582 = vst [vmem:[#allocation2 + $0x28] sm:$0xff] (!%p2715_p11), %v3517_v0 }
  0x63   : > { %583 = vst [vmem:[#allocation2 + $0x30] sm:$0xff] (!%p2715_p11), %v3517_v0  ;;  %584 = vst [vmem:[#allocation2 + $0x38] sm:$0xff] (!%p2715_p11), %v3517_v0 }
  0x67 PF: > { %v3057_v1 = vld [vmem:[%s3871_s18 + $0x4] ss:$16 sps:$4 sm:$0xff]   ;;  %v3059_v2 = vld [vmem:[%s3871_s18 + $0xc] ss:$16 sps:$4 sm:$0xff]   ;;  %v3061_v3 = vld [vmem:[%s3871_s18] ss:$16 sps:$4 sm:$0xff]  }
  0x68   : > { %1399 = vmatprep.subr.bf16.mxu0 %v3057_v1  ;;  %v3062_v4 = vld [vmem:[%s3871_s18 + $0x8] ss:$16 sps:$4 sm:$0xff]   ;;  %1485 = vmatprep.subr.bf16.mxu1 %v3059_v2  ;;  %v3063_v5 = vld [vmem:[%s3871_s18 + $0x24] ss:$16 sps:$4 sm:$0xff]   ;;  %v3065_v6 = vld [vmem:[%s3871_s18 + $0x2c] ss:$16 sps:$4 sm:$0xff]  }
  0x69   : > { %1400 = vmatpush1.bf16.msra.mxu0 %v3061_v3  ;;  %1486 = vmatpush1.bf16.msra.mxu1 %v3062_v4  ;;  %v3067_v7 = vld [vmem:[%s3871_s18 + $0x20] ss:$16 sps:$4 sm:$0xff]   ;;  %v3068_v8 = vld [vmem:[%s3871_s18 + $0x28] ss:$16 sps:$4 sm:$0xff]   ;;  %v3069_v9 = vld [vmem:[%s3871_s18 + $0x44] ss:$16 sps:$4 sm:$0xff]  }
  0x6a   : > { %1401 = vmatprep.subr.bf16.mxu0 %v3063_v5  ;;  %1487 = vmatprep.subr.bf16.mxu1 %v3065_v6  ;;  %v3071_v10 = vld [vmem:[%s3871_s18 + $0x4c] ss:$16 sps:$4 sm:$0xff]   ;;  %v3073_v11 = vld [vmem:[%s3871_s18 + $0x40] ss:$16 sps:$4 sm:$0xff]   ;;  %v3074_v12 = vld [vmem:[%s3871_s18 + $0x48] ss:$16 sps:$4 sm:$0xff]  }
  0x6b   : > { %v3075_v13 = vld [vmem:[%s3871_s18 + $0x64] ss:$16 sps:$4 sm:$0xff]   ;;  %v3077_v14 = vld [vmem:[%s3871_s18 + $0x6c] ss:$16 sps:$4 sm:$0xff]   ;;  %v3079_v15 = vld [vmem:[%s3871_s18 + $0x60] ss:$16 sps:$4 sm:$0xff]  }
  0x6c   : > { %v3080_v16 = vld [vmem:[%s3871_s18 + $0x68] ss:$16 sps:$4 sm:$0xff]   ;;  %v3081_v17 = vld [vmem:[%s3871_s18 + $0x84] ss:$16 sps:$4 sm:$0xff]   ;;  %v3083_v18 = vld [vmem:[%s3871_s18 + $0x8c] ss:$16 sps:$4 sm:$0xff]  }
  0x6d   : > { %1402 = vmatpush1.bf16.msra.mxu0 %v3067_v7  ;;  %1488 = vmatpush1.bf16.msra.mxu1 %v3068_v8  ;;  %v3085_v19 = vld [vmem:[%s3871_s18 + $0x80] ss:$16 sps:$4 sm:$0xff]   ;;  %v3086_v20 = vld [vmem:[%s3871_s18 + $0x88] ss:$16 sps:$4 sm:$0xff]   ;;  %v3087_v21 = vld [vmem:[%s3871_s18 + $0xa4] ss:$16 sps:$4 sm:$0xff]  }
  0x6e   : > { %1403 = vmatprep.subr.bf16.mxu0 %v3069_v9  ;;  %1489 = vmatprep.subr.bf16.mxu1 %v3071_v10  ;;  %v3089_v22 = vld [vmem:[%s3871_s18 + $0xac] ss:$16 sps:$4 sm:$0xff]   ;;  %v3091_v23 = vld [vmem:[%s3871_s18 + $0xa0] ss:$16 sps:$4 sm:$0xff]   ;;  %v3092_v24 = vld [vmem:[%s3871_s18 + $0xa8] ss:$16 sps:$4 sm:$0xff]  }
  0x6f   : > { %v3093_v25 = vld [vmem:[%s3871_s18 + $0xc4] ss:$16 sps:$4 sm:$0xff]   ;;  %v3095_v26 = vld [vmem:[%s3871_s18 + $0xcc] ss:$16 sps:$4 sm:$0xff]   ;;  %v3097_v27 = vld [vmem:[%s3871_s18 + $0xc0] ss:$16 sps:$4 sm:$0xff]  }
  0x70   : > { %v3098_v28 = vld [vmem:[%s3871_s18 + $0xc8] ss:$16 sps:$4 sm:$0xff]   ;;  %v3099_v29 = vld [vmem:[%s3871_s18 + $0xe4] ss:$16 sps:$4 sm:$0xff]   ;;  %v3101_v30 = vld [vmem:[%s3871_s18 + $0xec] ss:$16 sps:$4 sm:$0xff]  }
  0x71   : > { %1404 = vmatpush1.bf16.msra.mxu0 %v3073_v11  ;;  %1490 = vmatpush1.bf16.msra.mxu1 %v3074_v12  ;;  %v3103_v31 = vld [vmem:[%s3871_s18 + $0xe0] ss:$16 sps:$4 sm:$0xff]   ;;  %v3104_v32 = vld [vmem:[%s3871_s18 + $0xe8] ss:$16 sps:$4 sm:$0xff]   ;;  %v3105_v33 = vld [vmem:[%s3871_s18 + $0x104] ss:$16 sps:$4 sm:$0xff]  }
  0x72   : > { %1405 = vmatprep.subr.bf16.mxu0 %v3075_v13  ;;  %1491 = vmatprep.subr.bf16.mxu1 %v3077_v14  ;;  %v3107_v34 = vld [vmem:[%s3871_s18 + $0x10c] ss:$16 sps:$4 sm:$0xff]   ;;  %v3109_v35 = vld [vmem:[%s3871_s18 + $0x100] ss:$16 sps:$4 sm:$0xff]   ;;  %v3110_v36 = vld [vmem:[%s3871_s18 + $0x108] ss:$16 sps:$4 sm:$0xff]  }
  0x73   : > { %v3111_v37 = vld [vmem:[%s3871_s18 + $0x124] ss:$16 sps:$4 sm:$0xff]   ;;  %v3113_v38 = vld [vmem:[%s3871_s18 + $0x12c] ss:$16 sps:$4 sm:$0xff]   ;;  %v3115_v39 = vld [vmem:[%s3871_s18 + $0x120] ss:$16 sps:$4 sm:$0xff]  }
  0x74   : > { %v3116_v40 = vld [vmem:[%s3871_s18 + $0x128] ss:$16 sps:$4 sm:$0xff]   ;;  %v3117_v41 = vld [vmem:[%s3871_s18 + $0x144] ss:$16 sps:$4 sm:$0xff]   ;;  %v3119_v42 = vld [vmem:[%s3871_s18 + $0x14c] ss:$16 sps:$4 sm:$0xff]  }
  0x75   : > { %1406 = vmatpush1.bf16.msra.mxu0 %v3079_v15  ;;  %1492 = vmatpush1.bf16.msra.mxu1 %v3080_v16  ;;  %v3121_v43 = vld [vmem:[%s3871_s18 + $0x140] ss:$16 sps:$4 sm:$0xff]   ;;  %v3122_v44 = vld [vmem:[%s3871_s18 + $0x148] ss:$16 sps:$4 sm:$0xff]   ;;  %v3123_v45 = vld [vmem:[%s3871_s18 + $0x164] ss:$16 sps:$4 sm:$0xff]  }
  0x76   : > { %1407 = vmatprep.subr.bf16.mxu0 %v3081_v17  ;;  %1493 = vmatprep.subr.bf16.mxu1 %v3083_v18  ;;  %v3125_v46 = vld [vmem:[%s3871_s18 + $0x16c] ss:$16 sps:$4 sm:$0xff]   ;;  %v3127_v47 = vld [vmem:[%s3871_s18 + $0x160] ss:$16 sps:$4 sm:$0xff]   ;;  %v3128_v48 = vld [vmem:[%s3871_s18 + $0x168] ss:$16 sps:$4 sm:$0xff]  }
  0x77   : > { %v3155_v49 = vld [vmem:[%s4220_s0 + $0x4] ss:$16 sps:$4 sm:$0xff]   ;;  %v3131_v51 = vld [vmem:[%s3871_s18 + $0x18c] ss:$16 sps:$4 sm:$0xff]   ;;  %v3133_v52 = vld [vmem:[%s3871_s18 + $0x180] ss:$16 sps:$4 sm:$0xff]  }
  0x78   : > { %v3129_v50 = vld [vmem:[%s3871_s18 + $0x184] ss:$16 sps:$4 sm:$0xff]   ;;  %1431 = vmatprep.mubr.bf16.mxu0 %v3155_v49  ;;  %1517 = vmatprep.mubr.bf16.mxu1 %v3155_v49  ;;  %v3134_v53 = vld [vmem:[%s3871_s18 + $0x188] ss:$16 sps:$4 sm:$0xff]   ;;  %v3137_v55 = vld [vmem:[%s3871_s18 + $0x1ac] ss:$16 sps:$4 sm:$0xff]  }
  0x79   : > { %1408 = vmatpush1.bf16.msra.mxu0 %v3085_v19  ;;  %1494 = vmatpush1.bf16.msra.mxu1 %v3086_v20  ;;  %v3135_v54 = vld [vmem:[%s3871_s18 + $0x1a4] ss:$16 sps:$4 sm:$0xff]   ;;  %v3139_v56 = vld [vmem:[%s3871_s18 + $0x1a0] ss:$16 sps:$4 sm:$0xff]   ;;  %v3140_v57 = vld [vmem:[%s3871_s18 + $0x1a8] ss:$16 sps:$4 sm:$0xff]  }
  0x7a   : > { %1409 = vmatprep.subr.bf16.mxu0 %v3087_v21  ;;  %1495 = vmatprep.subr.bf16.mxu1 %v3089_v22  ;;  %v3141_v58 = vld [vmem:[%s3871_s18 + $0x1c4] ss:$16 sps:$4 sm:$0xff]   ;;  %v3143_v59 = vld [vmem:[%s3871_s18 + $0x1cc] ss:$16 sps:$4 sm:$0xff]   ;;  %v3145_v60 = vld [vmem:[%s3871_s18 + $0x1c0] ss:$16 sps:$4 sm:$0xff]  }
  0x7b   : > { %v3146_v61 = vld [vmem:[%s3871_s18 + $0x1c8] ss:$16 sps:$4 sm:$0xff]   ;;  %v3147_v62 = vld [vmem:[%s3871_s18 + $0x1e4] ss:$16 sps:$4 sm:$0xff]   ;;  %v3149_v63 = vld [vmem:[%s3871_s18 + $0x1ec] ss:$16 sps:$4 sm:$0xff]  }
  0x7c   : > { %v3151_v0 = vld [vmem:[%s3871_s18 + $0x1e0] ss:$16 sps:$4 sm:$0xff]   ;;  %v3152_v1 = vld [vmem:[%s3871_s18 + $0x1e8] ss:$16 sps:$4 sm:$0xff]   ;;  %v3158_v2 = vld [vmem:[%s3871_s18 + $0x204] ss:$16 sps:$4 sm:$0xff]  }
  0x7d   : > { %1410 = vmatpush1.bf16.msra.mxu0 %v3091_v23  ;;  %1496 = vmatpush1.bf16.msra.mxu1 %v3092_v24  ;;  %v3161_v3 = vld [vmem:[%s3871_s18 + $0x20c] ss:$16 sps:$4 sm:$0xff]   ;;  %v3153_v4 = vld [vmem:[%s4220_s0] ss:$16 sps:$4 sm:$0xff]   ;;  %v3159_v6 = vld [vmem:[%s3871_s18 + $0x208] ss:$16 sps:$4 sm:$0xff]  }
  0x7e   : > { %1411 = vmatprep.subr.bf16.mxu0 %v3093_v25  ;;  %1497 = vmatprep.subr.bf16.mxu1 %v3095_v26  ;;  %v3156_v5 = vld [vmem:[%s3871_s18 + $0x200] ss:$16 sps:$4 sm:$0xff]   ;;  %v3164_v7 = vld [vmem:[%s3871_s18 + $0x224] ss:$16 sps:$4 sm:$0xff]   ;;  %v3167_v8 = vld [vmem:[%s3871_s18 + $0x22c] ss:$16 sps:$4 sm:$0xff]  }
  0x7f   : > { %v3162_v9 = vld [vmem:[%s3871_s18 + $0x220] ss:$16 sps:$4 sm:$0xff]   ;;  %v3165_v10 = vld [vmem:[%s3871_s18 + $0x228] ss:$16 sps:$4 sm:$0xff]   ;;  %v3170_v11 = vld [vmem:[%s3871_s18 + $0x244] ss:$16 sps:$4 sm:$0xff]  }
  0x80   : > { %v3173_v12 = vld [vmem:[%s3871_s18 + $0x24c] ss:$16 sps:$4 sm:$0xff]   ;;  %v3168_v13 = vld [vmem:[%s3871_s18 + $0x240] ss:$16 sps:$4 sm:$0xff]   ;;  %v3171_v14 = vld [vmem:[%s3871_s18 + $0x248] ss:$16 sps:$4 sm:$0xff]  }
  0x81   : > { %1412 = vmatpush1.bf16.msra.mxu0 %v3097_v27  ;;  %1498 = vmatpush1.bf16.msra.mxu1 %v3098_v28  ;;  %v3176_v15 = vld [vmem:[%s3871_s18 + $0x264] ss:$16 sps:$4 sm:$0xff]   ;;  %v3179_v16 = vld [vmem:[%s3871_s18 + $0x26c] ss:$16 sps:$4 sm:$0xff]   ;;  %v3174_v17 = vld [vmem:[%s3871_s18 + $0x260] ss:$16 sps:$4 sm:$0xff]  }
  0x82   : > { %1413 = vmatprep.subr.bf16.mxu0 %v3099_v29  ;;  %1499 = vmatprep.subr.bf16.mxu1 %v3101_v30  ;;  %v3177_v18 = vld [vmem:[%s3871_s18 + $0x268] ss:$16 sps:$4 sm:$0xff]   ;;  %v3182_v19 = vld [vmem:[%s3871_s18 + $0x284] ss:$16 sps:$4 sm:$0xff]   ;;  %v3185_v20 = vld [vmem:[%s3871_s18 + $0x28c] ss:$16 sps:$4 sm:$0xff]  }
  0x83   : > { %v3180_v21 = vld [vmem:[%s3871_s18 + $0x280] ss:$16 sps:$4 sm:$0xff]   ;;  %v3183_v22 = vld [vmem:[%s3871_s18 + $0x288] ss:$16 sps:$4 sm:$0xff]   ;;  %v3188_v23 = vld [vmem:[%s3871_s18 + $0x2a4] ss:$16 sps:$4 sm:$0xff]  }
  0x84   : > { %v3191_v24 = vld [vmem:[%s3871_s18 + $0x2ac] ss:$16 sps:$4 sm:$0xff]   ;;  %v3186_v25 = vld [vmem:[%s3871_s18 + $0x2a0] ss:$16 sps:$4 sm:$0xff]   ;;  %v3189_v26 = vld [vmem:[%s3871_s18 + $0x2a8] ss:$16 sps:$4 sm:$0xff]  }
  0x85   : > { %1414 = vmatpush1.bf16.msra.mxu0 %v3103_v31  ;;  %1500 = vmatpush1.bf16.msra.mxu1 %v3104_v32  ;;  %v3194_v27 = vld [vmem:[%s3871_s18 + $0x2c4] ss:$16 sps:$4 sm:$0xff]   ;;  %v3197_v28 = vld [vmem:[%s3871_s18 + $0x2cc] ss:$16 sps:$4 sm:$0xff]   ;;  %v3192_v29 = vld [vmem:[%s3871_s18 + $0x2c0] ss:$16 sps:$4 sm:$0xff]  }
  0x86   : > { %1415 = vmatprep.subr.bf16.mxu0 %v3105_v33  ;;  %1501 = vmatprep.subr.bf16.mxu1 %v3107_v34  ;;  %v3195_v30 = vld [vmem:[%s3871_s18 + $0x2c8] ss:$16 sps:$4 sm:$0xff]   ;;  %v3254_v31 = vld [vmem:[%s4220_s0 + $0xc] ss:$16 sps:$4 sm:$0xff]   ;;  %v3200_v32 = vld [vmem:[%s3871_s18 + $0x2e4] ss:$16 sps:$4 sm:$0xff]  }
  0x87   : > { %v3203_v33 = vld [vmem:[%s3871_s18 + $0x2ec] ss:$16 sps:$4 sm:$0xff]   ;;  %v3198_v34 = vld [vmem:[%s3871_s18 + $0x2e0] ss:$16 sps:$4 sm:$0xff]   ;;  %p2976_p12 = scmp.ne.s32.totalorder %s3507_s20, 3 }
  0x88   : > { %v3227_v49 = vld [vmem:[%s3871_s18 + $0x36c] ss:$16 sps:$4 sm:$0xff]  }
  0x89   : > { %1416 = vmatpush1.bf16.msra.mxu0 %v3109_v35  ;;  %1502 = vmatpush1.bf16.msra.mxu1 %v3110_v36  ;;  %v3201_v35 = vld [vmem:[%s3871_s18 + $0x2e8] ss:$16 sps:$4 sm:$0xff]   ;;  %v3206_v36 = vld [vmem:[%s3871_s18 + $0x304] ss:$16 sps:$4 sm:$0xff]  }
  0x8a   : > { %1417 = vmatprep.subr.bf16.mxu0 %v3111_v37  ;;  %1503 = vmatprep.subr.bf16.mxu1 %v3113_v38  ;;  %v3209_v37 = vld [vmem:[%s3871_s18 + $0x30c] ss:$16 sps:$4 sm:$0xff]   ;;  %v3204_v38 = vld [vmem:[%s3871_s18 + $0x300] ss:$16 sps:$4 sm:$0xff]  }
  0x8d   : > { %1418 = vmatpush1.bf16.msra.mxu0 %v3115_v39  ;;  %1504 = vmatpush1.bf16.msra.mxu1 %v3116_v40  ;;  %v3207_v39 = vld [vmem:[%s3871_s18 + $0x308] ss:$16 sps:$4 sm:$0xff]   ;;  %v3212_v40 = vld [vmem:[%s3871_s18 + $0x324] ss:$16 sps:$4 sm:$0xff]  }
  0x8e   : > { %1419 = vmatprep.subr.bf16.mxu0 %v3117_v41  ;;  %1505 = vmatprep.subr.bf16.mxu1 %v3119_v42  ;;  %v3215_v41 = vld [vmem:[%s3871_s18 + $0x32c] ss:$16 sps:$4 sm:$0xff]   ;;  %v3210_v42 = vld [vmem:[%s3871_s18 + $0x320] ss:$16 sps:$4 sm:$0xff]  }
  0x91   : > { %1420 = vmatpush1.bf16.msra.mxu0 %v3121_v43  ;;  %1506 = vmatpush1.bf16.msra.mxu1 %v3122_v44  ;;  %v3213_v43 = vld [vmem:[%s3871_s18 + $0x328] ss:$16 sps:$4 sm:$0xff]   ;;  %v3218_v44 = vld [vmem:[%s3871_s18 + $0x344] ss:$16 sps:$4 sm:$0xff]  }
  0x92   : > { %1421 = vmatprep.subr.bf16.mxu0 %v3123_v45  ;;  %1507 = vmatprep.subr.bf16.mxu1 %v3125_v46  ;;  %v3221_v45 = vld [vmem:[%s3871_s18 + $0x34c] ss:$16 sps:$4 sm:$0xff]   ;;  %v3216_v46 = vld [vmem:[%s3871_s18 + $0x340] ss:$16 sps:$4 sm:$0xff]  }
  0x95   : > { %1422 = vmatpush1.bf16.msra.mxu0 %v3127_v47  ;;  %1508 = vmatpush1.bf16.msra.mxu1 %v3128_v48  ;;  %v3219_v47 = vld [vmem:[%s3871_s18 + $0x348] ss:$16 sps:$4 sm:$0xff]   ;;  %v3224_v48 = vld [vmem:[%s3871_s18 + $0x364] ss:$16 sps:$4 sm:$0xff]  }
  0x96   : > { %1423 = vmatprep.subr.bf16.mxu0 %v3129_v50  ;;  %1509 = vmatprep.subr.bf16.mxu1 %v3131_v51  ;;  %v3222_v50 = vld [vmem:[%s3871_s18 + $0x360] ss:$16 sps:$4 sm:$0xff]   ;;  %v3225_v51 = vld [vmem:[%s3871_s18 + $0x368] ss:$16 sps:$4 sm:$0xff]  }
  0x99   : > { %1424 = vmatpush1.bf16.msra.mxu0 %v3133_v52  ;;  %1510 = vmatpush1.bf16.msra.mxu1 %v3134_v53  ;;  %v3230_v52 = vld [vmem:[%s3871_s18 + $0x384] ss:$16 sps:$4 sm:$0xff]   ;;  %v3233_v53 = vld [vmem:[%s3871_s18 + $0x38c] ss:$16 sps:$4 sm:$0xff]  }
  0x9a   : > { %1425 = vmatprep.subr.bf16.mxu0 %v3135_v54  ;;  %1511 = vmatprep.subr.bf16.mxu1 %v3137_v55  ;;  %v3228_v54 = vld [vmem:[%s3871_s18 + $0x380] ss:$16 sps:$4 sm:$0xff]   ;;  %v3231_v55 = vld [vmem:[%s3871_s18 + $0x388] ss:$16 sps:$4 sm:$0xff]  }
  0x9d   : > { %1426 = vmatpush1.bf16.msra.mxu0 %v3139_v56  ;;  %1512 = vmatpush1.bf16.msra.mxu1 %v3140_v57  ;;  %v3236_v56 = vld [vmem:[%s3871_s18 + $0x3a4] ss:$16 sps:$4 sm:$0xff]   ;;  %v3239_v57 = vld [vmem:[%s3871_s18 + $0x3ac] ss:$16 sps:$4 sm:$0xff]  }
  0x9e   : > { %1427 = vmatprep.subr.bf16.mxu0 %v3141_v58  ;;  %1513 = vmatprep.subr.bf16.mxu1 %v3143_v59  ;;  %v3234_v58 = vld [vmem:[%s3871_s18 + $0x3a0] ss:$16 sps:$4 sm:$0xff]   ;;  %v3237_v59 = vld [vmem:[%s3871_s18 + $0x3a8] ss:$16 sps:$4 sm:$0xff]  }
  0xa1   : > { %1428 = vmatpush1.bf16.msra.mxu0 %v3145_v60  ;;  %1514 = vmatpush1.bf16.msra.mxu1 %v3146_v61  ;;  %v3242_v60 = vld [vmem:[%s3871_s18 + $0x3c4] ss:$16 sps:$4 sm:$0xff]   ;;  %v3245_v61 = vld [vmem:[%s3871_s18 + $0x3cc] ss:$16 sps:$4 sm:$0xff]  }
  0xa2   : > { %1429 = vmatprep.subr.bf16.mxu0 %v3147_v62  ;;  %1515 = vmatprep.subr.bf16.mxu1 %v3149_v63  ;;  %v3240_v62 = vld [vmem:[%s3871_s18 + $0x3c0] ss:$16 sps:$4 sm:$0xff]   ;;  %v3243_v63 = vld [vmem:[%s3871_s18 + $0x3c8] ss:$16 sps:$4 sm:$0xff]  }
  0xa5   : > { %1430 = vmatpush1.bf16.msra.mxu0 %v3151_v0  ;;  %1516 = vmatpush1.bf16.msra.mxu1 %v3152_v1  ;;  %v3248_v0 = vld [vmem:[%s3871_s18 + $0x3e4] ss:$16 sps:$4 sm:$0xff]   ;;  %v3251_v1 = vld [vmem:[%s3871_s18 + $0x3ec] ss:$16 sps:$4 sm:$0xff]  }
  0xa6   : > { %1442 = vmatprep.subr.bf16.mxu0 %v3158_v2  ;;  %1528 = vmatprep.subr.bf16.mxu1 %v3161_v3  ;;  %v3246_v2 = vld [vmem:[%s3871_s18 + $0x3e0] ss:$16 sps:$4 sm:$0xff]   ;;  %v3249_v3 = vld [vmem:[%s3871_s18 + $0x3e8] ss:$16 sps:$4 sm:$0xff]  }
  0xa8   : > { %1432 = vmatmul.mubr.bf16.vlgmr.msra.gmra.mrb[0].mxu0 %v3153_v4  ;;  %1518 = vmatmul.mubr.bf16.vlgmr.msra.gmra.mrb[0].mxu1 %v3153_v4  ;;  %v3252_v4 = vld [vmem:[%s4220_s0 + $0x8] ss:$16 sps:$4 sm:$0xff]  }
  0xa9   : > { %1443 = vmatpush1.bf16.msra.mxu0 %v3156_v5  ;;  %1529 = vmatpush1.bf16.msra.mxu1 %v3159_v6  ;;  %v3257_v5 = vld [vmem:[%s3869_s28 + $0x4] ss:$16 sps:$4 sm:$0xff]   ;;  %v3260_v6 = vld [vmem:[%s3869_s28 + $0xc] ss:$16 sps:$4 sm:$0xff]  }
  0xaa   : > { %1444 = vmatprep.subr.bf16.mxu0 %v3164_v7  ;;  %1530 = vmatprep.subr.bf16.mxu1 %v3167_v8  ;;  %v3255_v7 = vld [vmem:[%s3869_s28] ss:$16 sps:$4 sm:$0xff]   ;;  %v3258_v8 = vld [vmem:[%s3869_s28 + $0x8] ss:$16 sps:$4 sm:$0xff]  }
  0xab   : > { %1474 = vmatprep.mubr.bf16.mxu0 %v3254_v31  ;;  %1560 = vmatprep.mubr.bf16.mxu1 %v3254_v31  ;;  %v3291_v31 = vld [vmem:[%s3869_s28 + $0xc0] ss:$16 sps:$4 sm:$0xff]  }
  0xad   : > { %1445 = vmatpush1.bf16.msra.mxu0 %v3162_v9  ;;  %1531 = vmatpush1.bf16.msra.mxu1 %v3165_v10  ;;  %v3263_v9 = vld [vmem:[%s3869_s28 + $0x24] ss:$16 sps:$4 sm:$0xff]   ;;  %v3266_v10 = vld [vmem:[%s3869_s28 + $0x2c] ss:$16 sps:$4 sm:$0xff]  }
  0xae   : > { %1446 = vmatprep.subr.bf16.mxu0 %v3170_v11  ;;  %1532 = vmatprep.subr.bf16.mxu1 %v3173_v12  ;;  %v3261_v11 = vld [vmem:[%s3869_s28 + $0x20] ss:$16 sps:$4 sm:$0xff]   ;;  %v3264_v12 = vld [vmem:[%s3869_s28 + $0x28] ss:$16 sps:$4 sm:$0xff]  }
  0xb1   : > { %1447 = vmatpush1.bf16.msra.mxu0 %v3168_v13  ;;  %1533 = vmatpush1.bf16.msra.mxu1 %v3171_v14  ;;  %v3269_v13 = vld [vmem:[%s3869_s28 + $0x44] ss:$16 sps:$4 sm:$0xff]   ;;  %v3272_v14 = vld [vmem:[%s3869_s28 + $0x4c] ss:$16 sps:$4 sm:$0xff]  }
  0xb2   : > { %1448 = vmatprep.subr.bf16.mxu0 %v3176_v15  ;;  %1534 = vmatprep.subr.bf16.mxu1 %v3179_v16  ;;  %v3267_v15 = vld [vmem:[%s3869_s28 + $0x40] ss:$16 sps:$4 sm:$0xff]   ;;  %v3270_v16 = vld [vmem:[%s3869_s28 + $0x48] ss:$16 sps:$4 sm:$0xff]  }
  0xb5   : > { %1449 = vmatpush1.bf16.msra.mxu0 %v3174_v17  ;;  %1535 = vmatpush1.bf16.msra.mxu1 %v3177_v18  ;;  %v3275_v17 = vld [vmem:[%s3869_s28 + $0x64] ss:$16 sps:$4 sm:$0xff]   ;;  %v3278_v18 = vld [vmem:[%s3869_s28 + $0x6c] ss:$16 sps:$4 sm:$0xff]  }
  0xb6   : > { %1450 = vmatprep.subr.bf16.mxu0 %v3182_v19  ;;  %1536 = vmatprep.subr.bf16.mxu1 %v3185_v20  ;;  %v3273_v19 = vld [vmem:[%s3869_s28 + $0x60] ss:$16 sps:$4 sm:$0xff]   ;;  %v3276_v20 = vld [vmem:[%s3869_s28 + $0x68] ss:$16 sps:$4 sm:$0xff]  }
  0xb9   : > { %1451 = vmatpush1.bf16.msra.mxu0 %v3180_v21  ;;  %1537 = vmatpush1.bf16.msra.mxu1 %v3183_v22  ;;  %v3281_v21 = vld [vmem:[%s3869_s28 + $0x84] ss:$16 sps:$4 sm:$0xff]   ;;  %v3284_v22 = vld [vmem:[%s3869_s28 + $0x8c] ss:$16 sps:$4 sm:$0xff]  }
  0xba   : > { %1452 = vmatprep.subr.bf16.mxu0 %v3188_v23  ;;  %1538 = vmatprep.subr.bf16.mxu1 %v3191_v24  ;;  %v3279_v23 = vld [vmem:[%s3869_s28 + $0x80] ss:$16 sps:$4 sm:$0xff]   ;;  %v3282_v24 = vld [vmem:[%s3869_s28 + $0x88] ss:$16 sps:$4 sm:$0xff]  }
  0xbd   : > { %1453 = vmatpush1.bf16.msra.mxu0 %v3186_v25  ;;  %1539 = vmatpush1.bf16.msra.mxu1 %v3189_v26  ;;  %v3287_v25 = vld [vmem:[%s3869_s28 + $0xa4] ss:$16 sps:$4 sm:$0xff]   ;;  %v3290_v26 = vld [vmem:[%s3869_s28 + $0xac] ss:$16 sps:$4 sm:$0xff]  }
  0xbe   : > { %1454 = vmatprep.subr.bf16.mxu0 %v3194_v27  ;;  %1540 = vmatprep.subr.bf16.mxu1 %v3197_v28  ;;  %v3285_v27 = vld [vmem:[%s3869_s28 + $0xa0] ss:$16 sps:$4 sm:$0xff]   ;;  %v3288_v28 = vld [vmem:[%s3869_s28 + $0xa8] ss:$16 sps:$4 sm:$0xff]  }
  0xc1   : > { %1455 = vmatpush1.bf16.msra.mxu0 %v3192_v29  ;;  %1541 = vmatpush1.bf16.msra.mxu1 %v3195_v30  ;;  %v3293_v29 = vld [vmem:[%s3869_s28 + $0xc4] ss:$16 sps:$4 sm:$0xff]   ;;  %v3296_v30 = vld [vmem:[%s3869_s28 + $0xcc] ss:$16 sps:$4 sm:$0xff]  }
  0xc2   : > { %1456 = vmatprep.subr.bf16.mxu0 %v3200_v32  ;;  %1542 = vmatprep.subr.bf16.mxu1 %v3203_v33  ;;  %v3294_v32 = vld [vmem:[%s3869_s28 + $0xc8] ss:$16 sps:$4 sm:$0xff]   ;;  %v3299_v33 = vld [vmem:[%s3869_s28 + $0xe4] ss:$16 sps:$4 sm:$0xff]  }
  0xc5   : > { %1457 = vmatpush1.bf16.msra.mxu0 %v3198_v34  ;;  %1543 = vmatpush1.bf16.msra.mxu1 %v3201_v35  ;;  %v3302_v34 = vld [vmem:[%s3869_s28 + $0xec] ss:$16 sps:$4 sm:$0xff]   ;;  %v3297_v35 = vld [vmem:[%s3869_s28 + $0xe0] ss:$16 sps:$4 sm:$0xff]  }
  0xc6   : > { %1458 = vmatprep.subr.bf16.mxu0 %v3206_v36  ;;  %1544 = vmatprep.subr.bf16.mxu1 %v3209_v37  ;;  %v3300_v36 = vld [vmem:[%s3869_s28 + $0xe8] ss:$16 sps:$4 sm:$0xff]   ;;  %v3305_v37 = vld [vmem:[%s3869_s28 + $0x104] ss:$16 sps:$4 sm:$0xff]  }
  0xc9   : > { %1459 = vmatpush1.bf16.msra.mxu0 %v3204_v38  ;;  %1545 = vmatpush1.bf16.msra.mxu1 %v3207_v39  ;;  %v3308_v38 = vld [vmem:[%s3869_s28 + $0x10c] ss:$16 sps:$4 sm:$0xff]   ;;  %v3303_v39 = vld [vmem:[%s3869_s28 + $0x100] ss:$16 sps:$4 sm:$0xff]  }
  0xca   : > { %1460 = vmatprep.subr.bf16.mxu0 %v3212_v40  ;;  %1546 = vmatprep.subr.bf16.mxu1 %v3215_v41  ;;  %v3306_v40 = vld [vmem:[%s3869_s28 + $0x108] ss:$16 sps:$4 sm:$0xff]   ;;  %v3311_v41 = vld [vmem:[%s3869_s28 + $0x124] ss:$16 sps:$4 sm:$0xff]  }
  0xcd   : > { %1461 = vmatpush1.bf16.msra.mxu0 %v3210_v42  ;;  %1547 = vmatpush1.bf16.msra.mxu1 %v3213_v43  ;;  %v3314_v42 = vld [vmem:[%s3869_s28 + $0x12c] ss:$16 sps:$4 sm:$0xff]   ;;  %v3309_v43 = vld [vmem:[%s3869_s28 + $0x120] ss:$16 sps:$4 sm:$0xff]  }
  0xce   : > { %1462 = vmatprep.subr.bf16.mxu0 %v3218_v44  ;;  %1548 = vmatprep.subr.bf16.mxu1 %v3221_v45  ;;  %v3312_v44 = vld [vmem:[%s3869_s28 + $0x128] ss:$16 sps:$4 sm:$0xff]   ;;  %v3317_v45 = vld [vmem:[%s3869_s28 + $0x144] ss:$16 sps:$4 sm:$0xff]  }
  0xd1   : > { %1463 = vmatpush1.bf16.msra.mxu0 %v3216_v46  ;;  %1549 = vmatpush1.bf16.msra.mxu1 %v3219_v47  ;;  %v3320_v46 = vld [vmem:[%s3869_s28 + $0x14c] ss:$16 sps:$4 sm:$0xff]   ;;  %v3315_v47 = vld [vmem:[%s3869_s28 + $0x140] ss:$16 sps:$4 sm:$0xff]  }
  0xd2   : > { %1464 = vmatprep.subr.bf16.mxu0 %v3224_v48  ;;  %1550 = vmatprep.subr.bf16.mxu1 %v3227_v49  ;;  %v3318_v48 = vld [vmem:[%s3869_s28 + $0x148] ss:$16 sps:$4 sm:$0xff]   ;;  %v3323_v49 = vld [vmem:[%s3869_s28 + $0x164] ss:$16 sps:$4 sm:$0xff]  }
  0xd5   : > { %1465 = vmatpush1.bf16.msra.mxu0 %v3222_v50  ;;  %1551 = vmatpush1.bf16.msra.mxu1 %v3225_v51  ;;  %v3326_v50 = vld [vmem:[%s3869_s28 + $0x16c] ss:$16 sps:$4 sm:$0xff]   ;;  %v3321_v51 = vld [vmem:[%s3869_s28 + $0x160] ss:$16 sps:$4 sm:$0xff]  }
  0xd6   : > { %1466 = vmatprep.subr.bf16.mxu0 %v3230_v52  ;;  %1552 = vmatprep.subr.bf16.mxu1 %v3233_v53  ;;  %v3324_v52 = vld [vmem:[%s3869_s28 + $0x168] ss:$16 sps:$4 sm:$0xff]   ;;  %v3329_v53 = vld [vmem:[%s3869_s28 + $0x184] ss:$16 sps:$4 sm:$0xff]  }
  0xd9   : > { %1467 = vmatpush1.bf16.msra.mxu0 %v3228_v54  ;;  %1553 = vmatpush1.bf16.msra.mxu1 %v3231_v55  ;;  %v3332_v54 = vld [vmem:[%s3869_s28 + $0x18c] ss:$16 sps:$4 sm:$0xff]   ;;  %v3327_v55 = vld [vmem:[%s3869_s28 + $0x180] ss:$16 sps:$4 sm:$0xff]  }
  0xda   : > { %1468 = vmatprep.subr.bf16.mxu0 %v3236_v56  ;;  %1554 = vmatprep.subr.bf16.mxu1 %v3239_v57  ;;  %v3330_v56 = vld [vmem:[%s3869_s28 + $0x188] ss:$16 sps:$4 sm:$0xff]   ;;  %v3335_v57 = vld [vmem:[%s3869_s28 + $0x1a4] ss:$16 sps:$4 sm:$0xff]  }
  0xdd   : > { %1469 = vmatpush1.bf16.msra.mxu0 %v3234_v58  ;;  %1555 = vmatpush1.bf16.msra.mxu1 %v3237_v59  ;;  %v3338_v58 = vld [vmem:[%s3869_s28 + $0x1ac] ss:$16 sps:$4 sm:$0xff]   ;;  %v3333_v59 = vld [vmem:[%s3869_s28 + $0x1a0] ss:$16 sps:$4 sm:$0xff]  }
  0xde   : > { %1470 = vmatprep.subr.bf16.mxu0 %v3242_v60  ;;  %1556 = vmatprep.subr.bf16.mxu1 %v3245_v61  ;;  %v3336_v60 = vld [vmem:[%s3869_s28 + $0x1a8] ss:$16 sps:$4 sm:$0xff]   ;;  %v3341_v61 = vld [vmem:[%s3869_s28 + $0x1c4] ss:$16 sps:$4 sm:$0xff]  }
  0xe1   : > { %1471 = vmatpush1.bf16.msra.mxu0 %v3240_v62  ;;  %1557 = vmatpush1.bf16.msra.mxu1 %v3243_v63  ;;  %v3344_v62 = vld [vmem:[%s3869_s28 + $0x1cc] ss:$16 sps:$4 sm:$0xff]   ;;  %v3339_v63 = vld [vmem:[%s3869_s28 + $0x1c0] ss:$16 sps:$4 sm:$0xff]  }
  0xe2   : > { %1472 = vmatprep.subr.bf16.mxu0 %v3248_v0  ;;  %1558 = vmatprep.subr.bf16.mxu1 %v3251_v1  ;;  %v3342_v0 = vld [vmem:[%s3869_s28 + $0x1c8] ss:$16 sps:$4 sm:$0xff]   ;;  %v3347_v1 = vld [vmem:[%s3869_s28 + $0x1e4] ss:$16 sps:$4 sm:$0xff]  }
  0xe5   : > { %1473 = vmatpush1.bf16.msra.mxu0 %v3246_v2  ;;  %1559 = vmatpush1.bf16.msra.mxu1 %v3249_v3  ;;  %v3350_v2 = vld [vmem:[%s3869_s28 + $0x1ec] ss:$16 sps:$4 sm:$0xff]   ;;  %v3345_v3 = vld [vmem:[%s3869_s28 + $0x1e0] ss:$16 sps:$4 sm:$0xff]  }
  0xe6   : > { %2359 = vmatprep.subr.bf16.mxu0 %v3257_v5  ;;  %2445 = vmatprep.subr.bf16.mxu1 %v3260_v6  ;;  %v3353_v5 = vld [vmem:[%s3869_s28 + $0x204] ss:$16 sps:$4 sm:$0xff]   ;;  %v3356_v6 = vld [vmem:[%s3869_s28 + $0x20c] ss:$16 sps:$4 sm:$0xff]  }
  0xe8   : > { %1475 = vmatmul.mubr.bf16.vlgmr.msra.gmra.mrb[0].mxu0 %v3252_v4  ;;  %1561 = vmatmul.mubr.bf16.vlgmr.msra.gmra.mrb[0].mxu1 %v3252_v4  ;;  %v3348_v4 = vld [vmem:[%s3869_s28 + $0x1e8] ss:$16 sps:$4 sm:$0xff]  }
  0xe9   : > { %2360 = vmatpush1.bf16.msra.mxu0 %v3255_v7  ;;  %2446 = vmatpush1.bf16.msra.mxu1 %v3258_v8  ;;  %v719_v7 = vlaneseq }
  0xea   : > { %2361 = vmatprep.subr.bf16.mxu0 %v3263_v9  ;;  %2447 = vmatprep.subr.bf16.mxu1 %v3266_v10 }
  0xeb   : > { %v4080_v8 = vshrl.u32 %v719_v7, 7  ;;  %v3390_v7 = vld [vmem:[%s3869_s28 + $0x2c8] ss:$16 sps:$4 sm:$0xff]  }
  0xed   : > { %2362 = vmatpush1.bf16.msra.mxu0 %v3261_v11  ;;  %2448 = vmatpush1.bf16.msra.mxu1 %v3264_v12  ;;  %v721_v9 = vsub.s32 0, %v4080_v8  ;;  %v729_v10 = vsub.s32 2, %v4080_v8  ;;  %v717_v11 = vld [vmem:[%s563_s16] sm:$0xf]  ;;  %v725_v12 = vsub.s32 1, %v4080_v8 }
  0xee   : > { %2363 = vmatprep.subr.bf16.mxu0 %v3269_v13  ;;  %2449 = vmatprep.subr.bf16.mxu1 %v3272_v14  ;;  %v733_v13 = vsub.s32 3, %v4080_v8 }
  0xef   : > { %v722_v14 = vrot.slane %v717_v11, %v721_v9 }
  0xf1   : > { %2364 = vmatpush1.bf16.msra.mxu0 %v3267_v15  ;;  %2450 = vmatpush1.bf16.msra.mxu1 %v3270_v16  ;;  %v730_v15 = vrot.slane %v717_v11, %v729_v10  ;;  %v726_v16 = vrot.slane %v717_v11, %v725_v12 }
  0xf2   : > { %2365 = vmatprep.subr.bf16.mxu0 %v3275_v17  ;;  %2451 = vmatprep.subr.bf16.mxu1 %v3278_v18  ;;  %v734_v17 = vrot.slane %v717_v11, %v733_v13  ;;  %v3395_v11 = vld [vmem:[%s3869_s28 + $0x2e4] ss:$16 sps:$4 sm:$0xff]  }
  0xf5   : > { %2366 = vmatpush1.bf16.msra.mxu0 %v3273_v19  ;;  %2452 = vmatpush1.bf16.msra.mxu1 %v3276_v20 }
  0xf6   : > { %2367 = vmatprep.subr.bf16.mxu0 %v3281_v21  ;;  %2453 = vmatprep.subr.bf16.mxu1 %v3284_v22 }
  0xf9   : > { %2368 = vmatpush1.bf16.msra.mxu0 %v3279_v23  ;;  %2454 = vmatpush1.bf16.msra.mxu1 %v3282_v24 }
  0xfa   : > { %2369 = vmatprep.subr.bf16.mxu0 %v3287_v25  ;;  %2455 = vmatprep.subr.bf16.mxu1 %v3290_v26 }
  0xfd   : > { %2370 = vmatpush1.bf16.msra.mxu0 %v3285_v27  ;;  %2456 = vmatpush1.bf16.msra.mxu1 %v3288_v28 }
  0xfe   : > { %2371 = vmatprep.subr.bf16.mxu0 %v3293_v29  ;;  %2457 = vmatprep.subr.bf16.mxu1 %v3296_v30 }
 0x101   : > { %2372 = vmatpush1.bf16.msra.mxu0 %v3291_v31  ;;  %2458 = vmatpush1.bf16.msra.mxu1 %v3294_v32 }
 0x102   : > { %2373 = vmatprep.subr.bf16.mxu0 %v3299_v33  ;;  %2459 = vmatprep.subr.bf16.mxu1 %v3302_v34 }
 0x105   : > { %2374 = vmatpush1.bf16.msra.mxu0 %v3297_v35  ;;  %2460 = vmatpush1.bf16.msra.mxu1 %v3300_v36 }
 0x106   : > { %2375 = vmatprep.subr.bf16.mxu0 %v3305_v37  ;;  %2461 = vmatprep.subr.bf16.mxu1 %v3308_v38 }
 0x109   : > { %2376 = vmatpush1.bf16.msra.mxu0 %v3303_v39  ;;  %2462 = vmatpush1.bf16.msra.mxu1 %v3306_v40 }
 0x10a   : > { %2377 = vmatprep.subr.bf16.mxu0 %v3311_v41  ;;  %2463 = vmatprep.subr.bf16.mxu1 %v3314_v42 }
 0x10d   : > { %2378 = vmatpush1.bf16.msra.mxu0 %v3309_v43  ;;  %2464 = vmatpush1.bf16.msra.mxu1 %v3312_v44 }
 0x10e   : > { %2379 = vmatprep.subr.bf16.mxu0 %v3317_v45  ;;  %2465 = vmatprep.subr.bf16.mxu1 %v3320_v46  ;;  %v3351_v46 = vld [vmem:[%s3869_s28 + $0x200] ss:$16 sps:$4 sm:$0xff]  }
 0x111   : > { %2380 = vmatpush1.bf16.msra.mxu0 %v3315_v47  ;;  %2466 = vmatpush1.bf16.msra.mxu1 %v3318_v48  ;;  %v3354_v47 = vld [vmem:[%s3869_s28 + $0x208] ss:$16 sps:$4 sm:$0xff]   ;;  %v3359_v48 = vld [vmem:[%s3869_s28 + $0x224] ss:$16 sps:$4 sm:$0xff]  }
 0x112   : > { %2381 = vmatprep.subr.bf16.mxu0 %v3323_v49  ;;  %2467 = vmatprep.subr.bf16.mxu1 %v3326_v50  ;;  %v3362_v49 = vld [vmem:[%s3869_s28 + $0x22c] ss:$16 sps:$4 sm:$0xff]   ;;  %v3357_v50 = vld [vmem:[%s3869_s28 + $0x220] ss:$16 sps:$4 sm:$0xff]  }
 0x115   : > { %2382 = vmatpush1.bf16.msra.mxu0 %v3321_v51  ;;  %2468 = vmatpush1.bf16.msra.mxu1 %v3324_v52  ;;  %v3360_v51 = vld [vmem:[%s3869_s28 + $0x228] ss:$16 sps:$4 sm:$0xff]   ;;  %v3365_v52 = vld [vmem:[%s3869_s28 + $0x244] ss:$16 sps:$4 sm:$0xff]  }
 0x116   : > { %2383 = vmatprep.subr.bf16.mxu0 %v3329_v53  ;;  %2469 = vmatprep.subr.bf16.mxu1 %v3332_v54  ;;  %v3368_v53 = vld [vmem:[%s3869_s28 + $0x24c] ss:$16 sps:$4 sm:$0xff]   ;;  %v3363_v54 = vld [vmem:[%s3869_s28 + $0x240] ss:$16 sps:$4 sm:$0xff]  }
 0x119   : > { %2384 = vmatpush1.bf16.msra.mxu0 %v3327_v55  ;;  %2470 = vmatpush1.bf16.msra.mxu1 %v3330_v56  ;;  %v3366_v55 = vld [vmem:[%s3869_s28 + $0x248] ss:$16 sps:$4 sm:$0xff]   ;;  %v3371_v56 = vld [vmem:[%s3869_s28 + $0x264] ss:$16 sps:$4 sm:$0xff]  }
 0x11a   : > { %2385 = vmatprep.subr.bf16.mxu0 %v3335_v57  ;;  %2471 = vmatprep.subr.bf16.mxu1 %v3338_v58  ;;  %v3374_v57 = vld [vmem:[%s3869_s28 + $0x26c] ss:$16 sps:$4 sm:$0xff]   ;;  %v3369_v58 = vld [vmem:[%s3869_s28 + $0x260] ss:$16 sps:$4 sm:$0xff]  }
 0x11d   : > { %2386 = vmatpush1.bf16.msra.mxu0 %v3333_v59  ;;  %2472 = vmatpush1.bf16.msra.mxu1 %v3336_v60  ;;  %v3372_v59 = vld [vmem:[%s3869_s28 + $0x268] ss:$16 sps:$4 sm:$0xff]   ;;  %v3377_v60 = vld [vmem:[%s3869_s28 + $0x284] ss:$16 sps:$4 sm:$0xff]  }
 0x11e   : > { %2387 = vmatprep.subr.bf16.mxu0 %v3341_v61  ;;  %2473 = vmatprep.subr.bf16.mxu1 %v3344_v62  ;;  %v3380_v61 = vld [vmem:[%s3869_s28 + $0x28c] ss:$16 sps:$4 sm:$0xff]   ;;  %v3375_v62 = vld [vmem:[%s3869_s28 + $0x280] ss:$16 sps:$4 sm:$0xff]  }
 0x121   : > { %2388 = vmatpush1.bf16.msra.mxu0 %v3339_v63  ;;  %2474 = vmatpush1.bf16.msra.mxu1 %v3342_v0  ;;  %v3378_v63 = vld [vmem:[%s3869_s28 + $0x288] ss:$16 sps:$4 sm:$0xff]   ;;  %v3383_v0 = vld [vmem:[%s3869_s28 + $0x2a4] ss:$16 sps:$4 sm:$0xff]  }
 0x122   : > { %2389 = vmatprep.subr.bf16.mxu0 %v3347_v1  ;;  %2475 = vmatprep.subr.bf16.mxu1 %v3350_v2  ;;  %v3386_v1 = vld [vmem:[%s3869_s28 + $0x2ac] ss:$16 sps:$4 sm:$0xff]   ;;  %v3381_v2 = vld [vmem:[%s3869_s28 + $0x2a0] ss:$16 sps:$4 sm:$0xff]  }
 0x125   : > { %2390 = vmatpush1.bf16.msra.mxu0 %v3345_v3  ;;  %2476 = vmatpush1.bf16.msra.mxu1 %v3348_v4  ;;  %v3384_v3 = vld [vmem:[%s3869_s28 + $0x2a8] ss:$16 sps:$4 sm:$0xff]   ;;  %v3389_v4 = vld [vmem:[%s3869_s28 + $0x2c4] ss:$16 sps:$4 sm:$0xff]  }
 0x126   : > { %2402 = vmatprep.subr.bf16.mxu0 %v3353_v5  ;;  %2488 = vmatprep.subr.bf16.mxu1 %v3356_v6  ;;  %v3392_v5 = vld [vmem:[%s3869_s28 + $0x2cc] ss:$16 sps:$4 sm:$0xff]   ;;  %v3387_v6 = vld [vmem:[%s3869_s28 + $0x2c0] ss:$16 sps:$4 sm:$0xff]  }
 0x1bb   : > { %v1476_v18 = vpop.f32.mrb[0].mxu0  ;;  %v1562_v19 = vpop.f32.mrb[0].mxu1 }
 0x1bc   : > { %v2983_v20 = vadd.f32 %v1476_v18, %v722_v14  ;;  %v2987_v21 = vadd.f32 %v1562_v19, %v730_v15  ;;  %v1478_v22 = vpop.f32.mrb[1].mxu0  ;;  %v1564_v23 = vpop.f32.mrb[1].mxu1  ;;  %v3404_v18 = vld [vmem:[%s3869_s28 + $0x30c] ss:$16 sps:$4 sm:$0xff]   ;;  %v3399_v19 = vld [vmem:[%s3869_s28 + $0x300] ss:$16 sps:$4 sm:$0xff]  }
 0x1bd   : > { %v2984_v24 = vadd.f32 %v1478_v22, %v726_v16  ;;  %v2988_v25 = vadd.f32 %v1564_v23, %v734_v17  ;;  %v1480_v26 = vpop.f32.mrb[2].mxu0  ;;  %v1566_v27 = vpop.f32.mrb[2].mxu1  ;;  %v3410_v22 = vld [vmem:[%s3869_s28 + $0x32c] ss:$16 sps:$4 sm:$0xff]   ;;  %v3405_v23 = vld [vmem:[%s3869_s28 + $0x320] ss:$16 sps:$4 sm:$0xff]  }
 0x1be   : > { %v2985_v28 = vadd.f32 %v1480_v26, %v722_v14  ;;  %v2989_v29 = vadd.f32 %v1566_v27, %v730_v15  ;;  %v1482_v30 = vpop.f32.mrb[3].mxu0  ;;  %v1568_v31 = vpop.f32.mrb[3].mxu1  ;;  %v1571_v34 = vmax.f32 %v2983_v20, 0.0  ;;  %v1573_v35 = vmax.f32 %v2987_v21, 0.0  ;;  %v3398_v14 = vld [vmem:[%s3869_s28 + $0x2ec] ss:$16 sps:$4 sm:$0xff]  }
 0x1bf   : > { %v2986_v32 = vadd.f32 %v1482_v30, %v726_v16  ;;  %v2990_v33 = vadd.f32 %v1568_v31, %v734_v17  ;;  %v1572_v38 = vmax.f32 %v2984_v24, 0.0  ;;  %v1574_v39 = vmax.f32 %v2988_v25, 0.0  ;;  %v3393_v15 = vld [vmem:[%s3869_s28 + $0x2e0] ss:$16 sps:$4 sm:$0xff]   ;;  %v3396_v16 = vld [vmem:[%s3869_s28 + $0x2e8] ss:$16 sps:$4 sm:$0xff]  }
 0x1c0   : > { %v1575_v36 = vmax.f32 %v2985_v28, 0.0  ;;  %v1577_v37 = vmax.f32 %v2989_v29, 0.0  ;;  %v3401_v17 = vld [vmem:[%s3869_s28 + $0x304] ss:$16 sps:$4 sm:$0xff]   ;;  %v3402_v20 = vld [vmem:[%s3869_s28 + $0x308] ss:$16 sps:$4 sm:$0xff]  }
 0x1c1   : > { %v1576_v40 = vmax.f32 %v2986_v32, 0.0  ;;  %v1578_v41 = vmax.f32 %v2990_v33, 0.0  ;;  %v3407_v21 = vld [vmem:[%s3869_s28 + $0x324] ss:$16 sps:$4 sm:$0xff]   ;;  %v3408_v24 = vld [vmem:[%s3869_s28 + $0x328] ss:$16 sps:$4 sm:$0xff]  }
 0x1c2   : > { %v1587_v42 = vpack.c.bf16 %v1575_v36, %v1571_v34  ;;  %v4099_v43 = vpack.c.bf16 %v1577_v37, %v1573_v35  ;;  %v3413_v25 = vld [vmem:[%s3869_s28 + $0x344] ss:$16 sps:$4 sm:$0xff]   ;;  %v3416_v26 = vld [vmem:[%s3869_s28 + $0x34c] ss:$16 sps:$4 sm:$0xff]   ;;  %v3411_v27 = vld [vmem:[%s3869_s28 + $0x340] ss:$16 sps:$4 sm:$0xff]  }
 0x1c3   : > { %v1588_v44 = vpack.c.bf16 %v1576_v40, %v1572_v38  ;;  %v1590_v45 = vpack.c.bf16 %v1578_v41, %v1574_v39  ;;  %v3414_v28 = vld [vmem:[%s3869_s28 + $0x348] ss:$16 sps:$4 sm:$0xff]   ;;  %v3419_v29 = vld [vmem:[%s3869_s28 + $0x364] ss:$16 sps:$4 sm:$0xff]   ;;  %v3422_v30 = vld [vmem:[%s3869_s28 + $0x36c] ss:$16 sps:$4 sm:$0xff]  }
 0x1c4   : > { %v3417_v31 = vld [vmem:[%s3869_s28 + $0x360] ss:$16 sps:$4 sm:$0xff]   ;;  %v3420_v32 = vld [vmem:[%s3869_s28 + $0x368] ss:$16 sps:$4 sm:$0xff]   ;;  %v3425_v33 = vld [vmem:[%s3869_s28 + $0x384] ss:$16 sps:$4 sm:$0xff]  }
 0x1c5   : > { %2391 = vmatprep.mubr.bf16.mxu0 %v1588_v44  ;;  %2477 = vmatprep.mubr.bf16.mxu1 %v1588_v44  ;;  %v3428_v34 = vld [vmem:[%s3869_s28 + $0x38c] ss:$16 sps:$4 sm:$0xff]   ;;  %v3423_v35 = vld [vmem:[%s3869_s28 + $0x380] ss:$16 sps:$4 sm:$0xff]   ;;  %v3426_v36 = vld [vmem:[%s3869_s28 + $0x388] ss:$16 sps:$4 sm:$0xff]  }
 0x1c6   : > { %2392 = vmatmul.mubr.bf16.vlgmr.msra.gmra.mrb[4].mxu0 %v1587_v42  ;;  %2478 = vmatmul.mubr.bf16.vlgmr.msra.gmra.mrb[4].mxu1 %v1587_v42  ;;  %v3431_v37 = vld [vmem:[%s3869_s28 + $0x3a4] ss:$16 sps:$4 sm:$0xff]   ;;  %v3434_v38 = vld [vmem:[%s3869_s28 + $0x3ac] ss:$16 sps:$4 sm:$0xff]   ;;  %v3429_v39 = vld [vmem:[%s3869_s28 + $0x3a0] ss:$16 sps:$4 sm:$0xff]  }
 0x1c7   : > { %2403 = vmatpush1.bf16.msra.mxu0 %v3351_v46  ;;  %2489 = vmatpush1.bf16.msra.mxu1 %v3354_v47  ;;  %v3432_v40 = vld [vmem:[%s3869_s28 + $0x3a8] ss:$16 sps:$4 sm:$0xff]   ;;  %v3437_v41 = vld [vmem:[%s3869_s28 + $0x3c4] ss:$16 sps:$4 sm:$0xff]   ;;  %v3440_v42 = vld [vmem:[%s3869_s28 + $0x3cc] ss:$16 sps:$4 sm:$0xff]  }
 0x1c8   : > { %2434 = vmatprep.mubr.bf16.mxu0 %v1590_v45  ;;  %2520 = vmatprep.mubr.bf16.mxu1 %v1590_v45  ;;  %v3435_v44 = vld [vmem:[%s3869_s28 + $0x3c0] ss:$16 sps:$4 sm:$0xff]   ;;  %v3438_v45 = vld [vmem:[%s3869_s28 + $0x3c8] ss:$16 sps:$4 sm:$0xff]   ;;  %v3443_v46 = vld [vmem:[%s3869_s28 + $0x3e4] ss:$16 sps:$4 sm:$0xff]  }
 0x1c9   : > { %2404 = vmatprep.subr.bf16.mxu0 %v3359_v48  ;;  %2490 = vmatprep.subr.bf16.mxu1 %v3362_v49  ;;  %v3446_v47 = vld [vmem:[%s3869_s28 + $0x3ec] ss:$16 sps:$4 sm:$0xff]   ;;  %v3441_v48 = vld [vmem:[%s3869_s28 + $0x3e0] ss:$16 sps:$4 sm:$0xff]   ;;  %v3444_v49 = vld [vmem:[%s3869_s28 + $0x3e8] ss:$16 sps:$4 sm:$0xff]  }
 0x1cb   : > { %2405 = vmatpush1.bf16.msra.mxu0 %v3357_v50  ;;  %2491 = vmatpush1.bf16.msra.mxu1 %v3360_v51  ;;  %v1579_v50 = vld [vmem:[#allocation2] sm:$0xff]  ;;  %v1581_v51 = vld [vmem:[#allocation2 + $0x10] sm:$0xff] }
 0x1cc   : > { %2406 = vmatprep.subr.bf16.mxu0 %v3365_v52  ;;  %2492 = vmatprep.subr.bf16.mxu1 %v3368_v53  ;;  %v1580_v52 = vld [vmem:[#allocation2 + $0x8] sm:$0xff]  ;;  %v1582_v53 = vld [vmem:[#allocation2 + $0x18] sm:$0xff] }
 0x1cf   : > { %2407 = vmatpush1.bf16.msra.mxu0 %v3363_v54  ;;  %2493 = vmatpush1.bf16.msra.mxu1 %v3366_v55 }
 0x1d0   : > { %2408 = vmatprep.subr.bf16.mxu0 %v3371_v56  ;;  %2494 = vmatprep.subr.bf16.mxu1 %v3374_v57  ;;  %v1583_v56 = vld [vmem:[#allocation2 + $0x20] sm:$0xff]  ;;  %v1585_v57 = vld [vmem:[#allocation2 + $0x30] sm:$0xff] }
 0x1d3   : > { %2409 = vmatpush1.bf16.msra.mxu0 %v3369_v58  ;;  %2495 = vmatpush1.bf16.msra.mxu1 %v3372_v59 }
 0x1d4   : > { %2410 = vmatprep.subr.bf16.mxu0 %v3377_v60  ;;  %2496 = vmatprep.subr.bf16.mxu1 %v3380_v61 }
 0x1d7   : > { %2411 = vmatpush1.bf16.msra.mxu0 %v3375_v62  ;;  %2497 = vmatpush1.bf16.msra.mxu1 %v3378_v63  ;;  %v1584_v62 = vld [vmem:[#allocation2 + $0x28] sm:$0xff]  ;;  %v1586_v63 = vld [vmem:[#allocation2 + $0x38] sm:$0xff] }
 0x1d8   : > { %2412 = vmatprep.subr.bf16.mxu0 %v3383_v0  ;;  %2498 = vmatprep.subr.bf16.mxu1 %v3386_v1 }
 0x1db   : > { %2413 = vmatpush1.bf16.msra.mxu0 %v3381_v2  ;;  %2499 = vmatpush1.bf16.msra.mxu1 %v3384_v3 }
 0x1dc   : > { %2414 = vmatprep.subr.bf16.mxu0 %v3389_v4  ;;  %2500 = vmatprep.subr.bf16.mxu1 %v3392_v5 }
 0x1df   : > { %2415 = vmatpush1.bf16.msra.mxu0 %v3387_v6  ;;  %2501 = vmatpush1.bf16.msra.mxu1 %v3390_v7 }
 0x1e0   : > { %2416 = vmatprep.subr.bf16.mxu0 %v3395_v11  ;;  %2502 = vmatprep.subr.bf16.mxu1 %v3398_v14 }
 0x1e3   : > { %2417 = vmatpush1.bf16.msra.mxu0 %v3393_v15  ;;  %2503 = vmatpush1.bf16.msra.mxu1 %v3396_v16  ;;  %v2559_v15 = vld [vmem:[%s4224_s4] sm:$0xf] (!%p2976_p12) }
 0x1e4   : > { %2418 = vmatprep.subr.bf16.mxu0 %v3401_v17  ;;  %2504 = vmatprep.subr.bf16.mxu1 %v3404_v18  ;;  %v2564_v17 = vrot.slane (!%p2976_p12), %v2559_v15, %v721_v9  ;;  %v2568_v18 = vrot.slane (!%p2976_p12), %v2559_v15, %v725_v12 }
 0x1e7   : > { %2419 = vmatpush1.bf16.msra.mxu0 %v3399_v19  ;;  %2505 = vmatpush1.bf16.msra.mxu1 %v3402_v20  ;;  %v2572_v20 = vrot.slane (!%p2976_p12), %v2559_v15, %v729_v10 }
 0x1e8   : > { %2420 = vmatprep.subr.bf16.mxu0 %v3407_v21  ;;  %2506 = vmatprep.subr.bf16.mxu1 %v3410_v22  ;;  %v2576_v22 = vrot.slane (!%p2976_p12), %v2559_v15, %v733_v13 }
 0x1eb   : > { %2421 = vmatpush1.bf16.msra.mxu0 %v3405_v23  ;;  %2507 = vmatpush1.bf16.msra.mxu1 %v3408_v24 }
 0x1ec   : > { %2422 = vmatprep.subr.bf16.mxu0 %v3413_v25  ;;  %2508 = vmatprep.subr.bf16.mxu1 %v3416_v26 }
 0x1ef   : > { %2423 = vmatpush1.bf16.msra.mxu0 %v3411_v27  ;;  %2509 = vmatpush1.bf16.msra.mxu1 %v3414_v28 }
 0x1f0   : > { %2424 = vmatprep.subr.bf16.mxu0 %v3419_v29  ;;  %2510 = vmatprep.subr.bf16.mxu1 %v3422_v30 }
 0x1f3   : > { %2425 = vmatpush1.bf16.msra.mxu0 %v3417_v31  ;;  %2511 = vmatpush1.bf16.msra.mxu1 %v3420_v32 }
 0x1f4   : > { %2426 = vmatprep.subr.bf16.mxu0 %v3425_v33  ;;  %2512 = vmatprep.subr.bf16.mxu1 %v3428_v34 }
 0x1f7   : > { %2427 = vmatpush1.bf16.msra.mxu0 %v3423_v35  ;;  %2513 = vmatpush1.bf16.msra.mxu1 %v3426_v36 }
 0x1f8   : > { %2428 = vmatprep.subr.bf16.mxu0 %v3431_v37  ;;  %2514 = vmatprep.subr.bf16.mxu1 %v3434_v38 }
 0x1fb   : > { %2429 = vmatpush1.bf16.msra.mxu0 %v3429_v39  ;;  %2515 = vmatpush1.bf16.msra.mxu1 %v3432_v40 }
 0x1fc   : > { %2430 = vmatprep.subr.bf16.mxu0 %v3437_v41  ;;  %2516 = vmatprep.subr.bf16.mxu1 %v3440_v42 }
 0x1ff   : > { %2431 = vmatpush1.bf16.msra.mxu0 %v3435_v44  ;;  %2517 = vmatpush1.bf16.msra.mxu1 %v3438_v45 }
 0x200   : > { %2432 = vmatprep.subr.bf16.mxu0 %v3443_v46  ;;  %2518 = vmatprep.subr.bf16.mxu1 %v3446_v47 }
 0x203   : > { %2433 = vmatpush1.bf16.msra.mxu0 %v3441_v48  ;;  %2519 = vmatpush1.bf16.msra.mxu1 %v3444_v49 }
 0x206   : > { %2435 = vmatmul.mubr.bf16.vlgmr.msra.gmra.mrb[4].mxu0 %v4099_v43  ;;  %2521 = vmatmul.mubr.bf16.vlgmr.msra.gmra.mrb[4].mxu1 %v4099_v43 }
 0x2d9   : > { %v2436_v54 = vpop.f32.mrb[4].mxu0  ;;  %v2522_v55 = vpop.f32.mrb[4].mxu1  ;;  %2550 = sbr.rel (%p2976_p12) target bundleno = 746 (0x2ea), region = 71 }
 0x2da   : > { %v2531_v58 = vadd.f32 %v2436_v54, %v1579_v50  ;;  %v2533_v59 = vadd.f32 %v2522_v55, %v1581_v51  ;;  %v2438_v60 = vpop.f32.mrb[5].mxu0  ;;  %v2524_v61 = vpop.f32.mrb[5].mxu1 }
 0x2db   : > { %v2532_v0 = vadd.f32 %v2438_v60, %v1580_v52  ;;  %v2534_v1 = vadd.f32 %v2524_v61, %v1582_v53  ;;  %v2440_v2 = vpop.f32.mrb[6].mxu0  ;;  %v2526_v3 = vpop.f32.mrb[6].mxu1 }
 0x2dc   : > { %2539 = vst [vmem:[#allocation2] sm:$0xff] %v2531_v58  ;;  %2541 = vst [vmem:[#allocation2 + $0x10] sm:$0xff] %v2533_v59  ;;  %v2535_v43 = vadd.f32 %v2440_v2, %v1583_v56  ;;  %v2537_v4 = vadd.f32 %v2526_v3, %v1585_v57  ;;  %v2442_v5 = vpop.f32.mrb[7].mxu0  ;;  %v2528_v6 = vpop.f32.mrb[7].mxu1 }
 0x2dd   : > { %2540 = vst [vmem:[#allocation2 + $0x8] sm:$0xff] %v2532_v0  ;;  %2542 = vst [vmem:[#allocation2 + $0x18] sm:$0xff] %v2534_v1  ;;  %v2536_v7 = vadd.f32 %v2442_v5, %v1584_v62  ;;  %v2538_v11 = vadd.f32 %v2528_v6, %v1586_v63 }
 0x2de   : > { %2543 = vst [vmem:[#allocation2 + $0x20] sm:$0xff] %v2535_v43  ;;  %2545 = vst [vmem:[#allocation2 + $0x30] sm:$0xff] %v2537_v4 }
 0x2df   : > { %2544 = vst [vmem:[#allocation2 + $0x28] sm:$0xff] %v2536_v7  ;;  %2546 = vst [vmem:[#allocation2 + $0x38] sm:$0xff] %v2538_v11 }
 0x2e3   : > { %v2551_v14 = vld [vmem:[#allocation2] sm:$0xff]  ;;  %v2553_v19 = vld [vmem:[#allocation2 + $0x10] sm:$0xff] }
 0x2e4   : > { %v2552_v16 = vld [vmem:[#allocation2 + $0x8] sm:$0xff]  ;;  %v2554_v21 = vld [vmem:[#allocation2 + $0x18] sm:$0xff]  ;;  %v2581_v27 = vadd.f32 %v2564_v17, %v2551_v14  ;;  %v2583_v29 = vadd.f32 %v2572_v20, %v2553_v19 }
 0x2e5   : > { %v2555_v23 = vld [vmem:[#allocation2 + $0x20] sm:$0xff]  ;;  %v2557_v25 = vld [vmem:[#allocation2 + $0x30] sm:$0xff]  ;;  %v2582_v28 = vadd.f32 %v2568_v18, %v2552_v16  ;;  %v2584_v30 = vadd.f32 %v2576_v22, %v2554_v21 }
 0x2e6   : > { %v2556_v24 = vld [vmem:[#allocation2 + $0x28] sm:$0xff]  ;;  %v2558_v26 = vld [vmem:[#allocation2 + $0x38] sm:$0xff]  ;;  %v2585_v9 = vadd.f32 %v2564_v17, %v2555_v23  ;;  %v2587_v32 = vadd.f32 %v2572_v20, %v2557_v25  ;;  %2589 = vst [vmem:[#allocation4] sm:$0xff] %v2581_v27  ;;  %2591 = vst [vmem:[#allocation4 + $0x10] sm:$0xff] %v2583_v29 }
 0x2e7   : > { %v2586_v31 = vadd.f32 %v2568_v18, %v2556_v24  ;;  %v2588_v12 = vadd.f32 %v2576_v22, %v2558_v26  ;;  %2590 = vst [vmem:[#allocation4 + $0x8] sm:$0xff] %v2582_v28  ;;  %2592 = vst [vmem:[#allocation4 + $0x18] sm:$0xff] %v2584_v30 }
 0x2e8   : > { %2593 = vst [vmem:[#allocation4 + $0x20] sm:$0xff] %v2585_v9  ;;  %2595 = vst [vmem:[#allocation4 + $0x30] sm:$0xff] %v2587_v32 }
 0x2e9   : > { %2594 = vst [vmem:[#allocation4 + $0x28] sm:$0xff] %v2586_v31  ;;  %2596 = vst [vmem:[#allocation4 + $0x38] sm:$0xff] %v2588_v12 }
 0x2ea PF: > { %p4179_p13 = scmp.eq.s32.totalorder %s2702_s23, 3  ;;  %s3518_s16 = smov [#allocation4]  }
 0x2eb   : > { %s2607_s17 = sshll.u32 %s3518_s16, 4  ;;  %s2608_s17 = int_to_ptr.vmem [resolvable:$true] %s2607_s17 }
 0x2ec   : > { %s3447_s25 = scalar_lea.vmem %s2608_s17, 1024  ;;  %p3454_p3 = scmp.lt.s32.totalorder %s2608_s17, %s2608_s17 }
 0x2ed   : > { %p3448_p0 = scmp.ne.s32.totalorder %s2608_s17, %s3447_s25  ;;  %p3455_p4 = scmp.lt.s32.totalorder %s3447_s25, %s3447_s25 }
 0x2ef   : > { %p3449_p1 = pnand %p3448_p0, %p4179_p13  ;;  %p3456_p5 = por %p3455_p4, %p3454_p3 }
 0x2f1   : > { %p3450_p2 = pneg %p3449_p1 }
 0x2f3   : > { %p3457_p6 = pnand %p3456_p5, %p3450_p2 }
 0x2f5   : > { %3460 = shalt.err (!%p3457_p6)
}
 0x2f6   : > { %s3461_s23 = scalar_lea.hbm %s4225_s5, 1024 }
 0x2f7   : > { %p3462_p7 = scmp.ne.s32.totalorder %s4225_s5, %s3461_s23  ;;  %p3467_p10 = scmp.lt.u32.totalorder %s3461_s23, %s4225_s5 }
 0x2f9   : > { %p3463_p8 = pnand %p3462_p7, %p4179_p13 }
 0x2fb   : > { %p3464_p9 = pneg %p3463_p8 }
 0x2fd   : > { %p3469_p11 = pnand %p3467_p10, %p3464_p9 }
 0x2ff   : > { %3472 = shalt.err (!%p3469_p11)
}
 0x300   : > { %s3519_s7 = smov 512   ;;  %s3520_s8 = smov 32  }
 0x301   : > { %3008 = dma.vmem_to_hbm [thread:$0]  (%p4179_p13), %s2608_s17, 1024, %s4225_s5, [#allocation5], %s3519_s7, %s3519_s7, %s3520_s8  }
 0x302   : > { %3494 = dma.done.wait (%p4179_p13), [#allocation5], 1024  }
 0x303   : > { %3496 = vsyncadd (%p4179_p13), [#allocation5], 4294966272 }
 0x304 PF: > { %s16_s22 = sadd.s32 1, %s3515_s22   ;;  %s4227_s18 = smov %s3503_s19 }
 0x305   : > { %p13_p12 = scmp.ge.s32.totalorder %s16_s22, 6   ;;  %s4228_s19 = smov %s3587_s27 }
 0x306   : > { %s4229_s20 = smov %s3511_s21  ;;  %s4230_s21 = smov %s4232_s24 }
 0x307   :  { %15 = sbr.rel (!%p13_p12) target bundleno = 3 (0x3), region = 113 }
 0x30e   :  { %2623 = vsyncpa [#allocation5], 1 }
 0x30f   :  { %2625 = vsyncpa [#allocation5 + $0x1], 1 }

</bundles_post_ra>
